<compile_context>
chip_gen: v7x
topology: tpu7x:2x2x1
jax: 0.10.0
libtpu: 0.0.40
codegen_flags: <defaults>
</compile_context>

<pallas_src>
import math
import functools

import jax
import jax.numpy as jnp
from jax import lax
from jax.experimental import pallas as pl
from jax.experimental.pallas import tpu as pltpu

LN_EPS = 1e-12            # BertConfig default layer_norm_eps
_GELU_C = math.sqrt(2.0 / math.pi)


# ----------------------------------------------------------------------------
# In-kernel helpers (f32 elementwise math)
# ----------------------------------------------------------------------------
def _gelu_tanh(y):
    # tanh-approx GELU; tanh lowers to the EUP (separate VLIW slot -> ~free).
    # TODO(synk): ~1e-3 off PyTorch's exact-erf nn.GELU; swap in erf if needed.
    return 0.5 * y * (1.0 + jnp.tanh(_GELU_C * (y + 0.044715 * y * y * y)))


def _add_layernorm(a, b, gamma, beta):
    h = a + b
    mu = jnp.mean(h, axis=-1, keepdims=True)
    var = jnp.mean(jnp.square(h - mu), axis=-1, keepdims=True)
    return (h - mu) * lax.rsqrt(var + LN_EPS) * gamma + beta


# ----------------------------------------------------------------------------
# Fused whole-forward kernel: one grid step = (batch row b, layer l)
# ----------------------------------------------------------------------------
def _fused_forward_kernel(abh_ref, abl_ref, ag_ref, xw_ref, xb_ref,
                          wqkv_ref, bqkv_ref, wo_ref, bo_ref,
                          ln1g_ref, ln1b_ref, wi_ref, bi_ref,
                          wo2_ref, bo2_ref, ln2g_ref, ln2b_ref,
                          o_ref, x_sc, *, num_heads):
    l = pl.program_id(1)
    n_layers = pl.num_programs(1)
    S_H = abh_ref.shape[1]
    S_L = abl_ref.shape[1]

    # --- layer 0: build x = concat([Ab_H, Ab_L, x_emb(Ag)]) directly in VMEM --
    @pl.when(l == 0)
    def _():
        x_sc[0:S_H, :] = abh_ref[0]
        x_sc[S_H:S_H + S_L, :] = abl_ref[0]
        ag = jnp.dot(ag_ref[0], xw_ref[...],
                     preferred_element_type=jnp.float32) + xb_ref[...]
        x_sc[S_H + S_L:, :] = ag

    x = x_sc[...]                      # (S, D) f32, resident across layers
    S, D = x.shape
    Dh = D // num_heads

    # --- fused QKV projection (bf16 MXU operands, f32 accumulation) ----------
    # 1/sqrt(Dh) attention scale is pre-folded into the Q weights/bias.
    qkv = jnp.dot(x.astype(jnp.bfloat16), wqkv_ref[0],
                  preferred_element_type=jnp.float32) + bqkv_ref[0]   # (S, 3D)

    # --- multi-head self-attention; heads unrolled (static, small H) ---------
    ctx_heads = []
    for h in range(num_heads):
        q = qkv[:, h * Dh:(h + 1) * Dh]
        k = qkv[:, D + h * Dh:D + (h + 1) * Dh]
        v = qkv[:, 2 * D + h * Dh:2 * D + (h + 1) * Dh]
        s = lax.dot_general(q.astype(jnp.bfloat16), k.astype(jnp.bfloat16),
                            (((1,), (1,)), ((), ())),
                            preferred_element_type=jnp.float32)       # (S, S)
        m = jnp.max(s, axis=-1, keepdims=True)
        p = jnp.exp(s - m)
        p = p * pl.reciprocal(jnp.sum(p, axis=-1, keepdims=True), approx=True)
        ctx_heads.append(jnp.dot(p.astype(jnp.bfloat16), v.astype(jnp.bfloat16),
                                 preferred_element_type=jnp.float32))  # (S, Dh)
    ctx = jnp.concatenate(ctx_heads, axis=-1)                          # (S, D)

    # --- output projection + Add&LN (BertSelfOutput; dropout = identity) -----
    attn = jnp.dot(ctx.astype(jnp.bfloat16), wo_ref[0],
                   preferred_element_type=jnp.float32) + bo_ref[0]
    h1 = _add_layernorm(attn, x, ln1g_ref[0], ln1b_ref[0])

    # --- GELU FFN + Add&LN (BertIntermediate + BertOutput) -------------------
    inter = jnp.dot(h1.astype(jnp.bfloat16), wi_ref[0],
                    preferred_element_type=jnp.float32) + bi_ref[0]
    inter = _gelu_tanh(inter)
    ffn = jnp.dot(inter.astype(jnp.bfloat16), wo2_ref[0],
                  preferred_element_type=jnp.float32) + bo2_ref[0]
    x_new = _add_layernorm(ffn, h1, ln2g_ref[0], ln2b_ref[0])

    x_sc[...] = x_new                  # carry activation to the next layer

    @pl.when(l == n_layers - 1)
    def _():
        o_ref[0] = x_new               # single HBM writeback per batch row


# ----------------------------------------------------------------------------
# Wrapper: whole forward = one pallas_call
# ----------------------------------------------------------------------------
_LAYER_W_NAMES = ("wqkv", "bqkv", "wo", "bo", "ln1_g", "ln1_b",
                  "wi", "bi", "wo2", "bo2", "ln2_g", "ln2_b")


def _full_nbytes(a):
    n = 1
    for d in a.shape:
        n *= d
    return n * a.dtype.itemsize


def _block_nbytes(a):
    n = 1
    for d in a.shape[1:]:
        n *= d
    return n * a.dtype.itemsize


@functools.partial(jax.jit, static_argnames=("num_heads",))
def mixed_model_forward(fparams, Ab_H_emb, Ab_L_emb, Ag_emb,
                        training_mask=None, *, num_heads):
    del training_mask  # unused in the PyTorch forward
    B, S_H, D = Ab_H_emb.shape
    S_L = Ab_L_emb.shape[1]
    S_ag = Ag_emb.shape[1]
    S = S_H + S_L + S_ag
    L = fparams["wqkv"].shape[0]

    layer_ws = tuple(fparams[n] for n in _LAYER_W_NAMES)

    def batch_spec(a):   # indexed by batch only -> fetched once per b
        return pl.BlockSpec((1,) + a.shape[1:],
                            lambda b, l, _nd=a.ndim: (b,) + (0,) * (_nd - 1))

    def const_spec(a):   # whole (tiny) array resident
        return pl.BlockSpec(a.shape, lambda b, l, _nd=a.ndim: (0,) * _nd)

    def layer_spec(a):   # indexed by layer -> layer l+1 prefetched during layer l
        return pl.BlockSpec((1,) + a.shape[1:],
                            lambda b, l, _nd=a.ndim: (l,) + (0,) * (_nd - 1))

    in_specs = ([batch_spec(Ab_H_emb), batch_spec(Ab_L_emb), batch_spec(Ag_emb),
                 const_spec(fparams["x_emb_w"]), const_spec(fparams["x_emb_b"])]
                + [layer_spec(a) for a in layer_ws])
    out_spec = pl.BlockSpec((1, S, D), lambda b, l: (b, 0, 0))

    # Explicit VMEM budget: double-buffered per-step blocks + scratch + headroom.
    per_step = (sum(_block_nbytes(a) for a in layer_ws)
                + _block_nbytes(Ab_H_emb) + _block_nbytes(Ab_L_emb)
                + _block_nbytes(Ag_emb)
                + _full_nbytes(fparams["x_emb_w"]) + _full_nbytes(fparams["x_emb_b"])
                + S * D * 4)                       # output block
    vmem_bytes = 2 * per_step + S * D * 4 + (8 << 20)
    vmem_bytes = min(max(vmem_bytes, 32 << 20), 64 << 20)

    return pl.pallas_call(
        functools.partial(_fused_forward_kernel, num_heads=num_heads),
        grid=(B, L),
        in_specs=in_specs,
        out_specs=out_spec,
        out_shape=jax.ShapeDtypeStruct((B, S, D), jnp.float32),
        scratch_shapes=[pltpu.VMEM((S, D), jnp.float32)],
        compiler_params=pltpu.CompilerParams(
            dimension_semantics=("parallel", "arbitrary"),
            vmem_limit_bytes=vmem_bytes),
    )(Ab_H_emb, Ab_L_emb, Ag_emb,
      fparams["x_emb_w"], fparams["x_emb_b"], *layer_ws)


# ----------------------------------------------------------------------------
# Deterministic parameter init (BERT-style std=0.02) + fused/stacked repacking
# ----------------------------------------------------------------------------
def init_params(key, ag_edim, d_model, num_heads, fd_dim, num_layers):
    std = 0.02
    keys = iter(jax.random.split(key, 4 + num_layers * 16))

    def w(shape):
        return (std * jax.random.normal(next(keys), shape)).astype(jnp.float32)

    params = {"x_emb_w": w((ag_edim, d_model)), "x_emb_b": w((d_model,)), "layers": []}
    for _ in range(num_layers):
        params["layers"].append({
            "wq": w((d_model, d_model)), "bq": w((d_model,)),
            "wk": w((d_model, d_model)), "bk": w((d_model,)),
            "wv": w((d_model, d_model)), "bv": w((d_model,)),
            "wo": w((d_model, d_model)), "bo": w((d_model,)),
            "ln1_g": jnp.ones((d_model,), jnp.float32),
            "ln1_b": jnp.zeros((d_model,), jnp.float32),
            "wi": w((d_model, fd_dim)), "bi": w((fd_dim,)),
            "wo2": w((fd_dim, d_model)), "bo2": w((d_model,)),
            "ln2_g": jnp.ones((d_model,), jnp.float32),
            "ln2_b": jnp.zeros((d_model,), jnp.float32),
        })
    return params


def fuse_params(raw, num_heads):
    """QKV concat, 1/sqrt(Dh) folded into Q, bf16 matmul weights, stacked over layers."""
    D = raw["x_emb_w"].shape[1]
    fd = raw["layers"][0]["wi"].shape[1]
    scale = 1.0 / math.sqrt(D // num_heads)

    def stack(fn):
        return jnp.stack([fn(p) for p in raw["layers"]])

    return {
        "x_emb_w": raw["x_emb_w"],
        "x_emb_b": raw["x_emb_b"].reshape(1, D),
        "wqkv": stack(lambda p: jnp.concatenate(
            [p["wq"] * scale, p["wk"], p["wv"]], axis=1).astype(jnp.bfloat16)),
        "bqkv": stack(lambda p: jnp.concatenate(
            [p["bq"] * scale, p["bk"], p["bv"]]).reshape(1, 3 * D)),
        "wo": stack(lambda p: p["wo"].astype(jnp.bfloat16)),
        "bo": stack(lambda p: p["bo"].reshape(1, D)),
        "ln1_g": stack(lambda p: p["ln1_g"].reshape(1, D)),
        "ln1_b": stack(lambda p: p["ln1_b"].reshape(1, D)),
        "wi": stack(lambda p: p["wi"].astype(jnp.bfloat16)),
        "bi": stack(lambda p: p["bi"].reshape(1, fd)),
        "wo2": stack(lambda p: p["wo2"].astype(jnp.bfloat16)),
        "bo2": stack(lambda p: p["bo2"].reshape(1, D)),
        "ln2_g": stack(lambda p: p["ln2_g"].reshape(1, D)),
        "ln2_b": stack(lambda p: p["ln2_b"].reshape(1, D)),
    }


# ----------------------------------------------------------------------------
# Pure-JAX f32 reference (exact-erf GELU) for a sanity check
# ----------------------------------------------------------------------------
def ref_forward(params, Ab_H, Ab_L, Ag, num_heads):
    H = num_heads

    def ln(h, g, b):
        mu = jnp.mean(h, -1, keepdims=True)
        var = jnp.mean((h - mu) ** 2, -1, keepdims=True)
        return (h - mu) / jnp.sqrt(var + LN_EPS) * g + b

    x = jnp.concatenate([Ab_H, Ab_L, Ag @ params["x_emb_w"] + params["x_emb_b"]], axis=1)
    B, S, D = x.shape
    Dh = D // H
    for p in params["layers"]:
        q = (x @ p["wq"] + p["bq"]).reshape(B, S, H, Dh).transpose(0, 2, 1, 3)
        k = (x @ p["wk"] + p["bk"]).reshape(B, S, H, Dh).transpose(0, 2, 1, 3)
        v = (x @ p["wv"] + p["bv"]).reshape(B, S, H, Dh).transpose(0, 2, 1, 3)
        s = jnp.einsum("bhqd,bhkd->bhqk", q, k) / math.sqrt(Dh)
        a = jax.nn.softmax(s, axis=-1)
        ctx = jnp.einsum("bhqk,bhkd->bhqd", a, v).transpose(0, 2, 1, 3).reshape(B, S, D)
        h1 = ln(ctx @ p["wo"] + p["bo"] + x, p["ln1_g"], p["ln1_b"])
        inter = h1 @ p["wi"] + p["bi"]
        inter = 0.5 * inter * (1.0 + jax.scipy.special.erf(inter / math.sqrt(2.0)))
        x = ln(inter @ p["wo2"] + p["bo2"] + h1, p["ln2_g"], p["ln2_b"])
    return x


if __name__ == "__main__":
    # Small synthetic config consistent with the module's __init__
    B, S_H, S_L, S_AG = 2, 8, 8, 8
    ag_edim, d_model, num_heads, fd_dim, num_layers = 24, 32, 4, 64, 2

    key = jax.random.PRNGKey(0)
    k_params, k_h, k_l, k_g = jax.random.split(key, 4)

    raw_params = init_params(k_params, ag_edim, d_model, num_heads, fd_dim, num_layers)
    fparams = fuse_params(raw_params, num_heads)

    Ab_H_emb = jax.random.normal(k_h, (B, S_H, d_model), dtype=jnp.float32)
    Ab_L_emb = jax.random.normal(k_l, (B, S_L, d_model), dtype=jnp.float32)
    Ag_emb = jax.random.normal(k_g, (B, S_AG, ag_edim), dtype=jnp.float32)
    training_mask = jnp.ones((B, S_H + S_L + S_AG), dtype=jnp.float32)  # unused in forward

    out = mixed_model_forward(fparams, Ab_H_emb, Ab_L_emb, Ag_emb, training_mask,
                              num_heads=num_heads)
    out = jax.block_until_ready(out)

    ref = ref_forward(raw_params, Ab_H_emb, Ab_L_emb, Ag_emb, num_heads)
    max_err = float(jnp.max(jnp.abs(out - ref)))
    assert out.shape == (B, S_H + S_L + S_AG, d_model)
    assert max_err < 5e-2, f"mismatch vs reference: {max_err}"

    print("KERNEL_OK")
</pallas_src>

<mosaic_0001>
module attributes {stable_mosaic.version = 11 : i64} {
  func.func @_fused_forward_kernel(%arg0: i32, %arg1: i32, %arg2: memref<1x8x32xf32, #tpu.memory_space<vmem>>, %arg3: memref<1x8x32xf32, #tpu.memory_space<vmem>>, %arg4: memref<1x8x24xf32, #tpu.memory_space<vmem>>, %arg5: memref<24x32xf32, #tpu.memory_space<vmem>>, %arg6: memref<1x32xf32, #tpu.memory_space<vmem>>, %arg7: memref<1x32x96xbf16, #tpu.memory_space<vmem>>, %arg8: memref<1x1x96xf32, #tpu.memory_space<vmem>>, %arg9: memref<1x32x32xbf16, #tpu.memory_space<vmem>>, %arg10: memref<1x1x32xf32, #tpu.memory_space<vmem>>, %arg11: memref<1x1x32xf32, #tpu.memory_space<vmem>>, %arg12: memref<1x1x32xf32, #tpu.memory_space<vmem>>, %arg13: memref<1x32x64xbf16, #tpu.memory_space<vmem>>, %arg14: memref<1x1x64xf32, #tpu.memory_space<vmem>>, %arg15: memref<1x64x32xbf16, #tpu.memory_space<vmem>>, %arg16: memref<1x1x32xf32, #tpu.memory_space<vmem>>, %arg17: memref<1x1x32xf32, #tpu.memory_space<vmem>>, %arg18: memref<1x1x32xf32, #tpu.memory_space<vmem>>, %arg19: memref<1x24x32xf32, #tpu.memory_space<vmem>>, %arg20: memref<24x32xf32, #tpu.memory_space<vmem>>) attributes {dimension_semantics = [#tpu.dimension_semantics<parallel>, #tpu.dimension_semantics<arbitrary>], iteration_bounds = array<i64: 2, 2>, scalar_prefetch = 0 : i64, scratch_operands = 1 : i64, tpu.core_type = #tpu.core_type<tc>, window_params = [{transform_indices = @transform_0, window_bounds = array<i64: 1, 8, 32>}, {transform_indices = @transform_1, window_bounds = array<i64: 1, 8, 32>}, {transform_indices = @transform_2, window_bounds = array<i64: 1, 8, 24>}, {pipeline_mode = #tpu.pipeline_mode<synchronous>, transform_indices = @transform_3, window_bounds = array<i64: 24, 32>}, {pipeline_mode = #tpu.pipeline_mode<synchronous>, transform_indices = @transform_4, window_bounds = array<i64: 1, 32>}, {transform_indices = @transform_5, window_bounds = array<i64: 1, 32, 96>}, {transform_indices = @transform_6, window_bounds = array<i64: 1, 1, 96>}, {transform_indices = @transform_7, window_bounds = array<i64: 1, 32, 32>}, {transform_indices = @transform_8, window_bounds = array<i64: 1, 1, 32>}, {transform_indices = @transform_9, window_bounds = array<i64: 1, 1, 32>}, {transform_indices = @transform_10, window_bounds = array<i64: 1, 1, 32>}, {transform_indices = @transform_11, window_bounds = array<i64: 1, 32, 64>}, {transform_indices = @transform_12, window_bounds = array<i64: 1, 1, 64>}, {transform_indices = @transform_13, window_bounds = array<i64: 1, 64, 32>}, {transform_indices = @transform_14, window_bounds = array<i64: 1, 1, 32>}, {transform_indices = @transform_15, window_bounds = array<i64: 1, 1, 32>}, {transform_indices = @transform_16, window_bounds = array<i64: 1, 1, 32>}, {transform_indices = @transform_17, window_bounds = array<i64: 1, 24, 32>}]} {
    %c0_i32 = arith.constant 0 : i32
    %0 = arith.cmpi eq, %arg1, %c0_i32 : i32
    %1 = arith.extui %0 : i1 to i32
    %c0_i32_0 = arith.constant 0 : i32
    %2 = arith.cmpi ne, %1, %c0_i32_0 : i32
    scf.if %2 {
      %c0_74 = arith.constant 0 : index
      %c0_75 = arith.constant 0 : index
      %c0_76 = arith.constant 0 : index
      %184 = vector.load %arg2[%c0_74, %c0_75, %c0_76] : memref<1x8x32xf32, #tpu.memory_space<vmem>>, vector<1x8x32xf32>
      %185 = vector.shape_cast %184 : vector<1x8x32xf32> to vector<8x32xf32>
      %c0_77 = arith.constant 0 : index
      %c0_78 = arith.constant 0 : index
      %186 = vector.load %arg20[%c0_77, %c0_78] : memref<24x32xf32, #tpu.memory_space<vmem>>, vector<8x32xf32>
      tpu.vector_store %arg20[%c0_77, %c0_78], %185 {strides = array<i32>} : memref<24x32xf32, #tpu.memory_space<vmem>>, vector<8x32xf32>,
      %c0_79 = arith.constant 0 : index
      %c0_80 = arith.constant 0 : index
      %c0_81 = arith.constant 0 : index
      %187 = vector.load %arg3[%c0_79, %c0_80, %c0_81] : memref<1x8x32xf32, #tpu.memory_space<vmem>>, vector<1x8x32xf32>
      %188 = vector.shape_cast %187 : vector<1x8x32xf32> to vector<8x32xf32>
      %c8 = arith.constant 8 : index
      %c0_82 = arith.constant 0 : index
      %189 = vector.load %arg20[%c8, %c0_82] : memref<24x32xf32, #tpu.memory_space<vmem>>, vector<8x32xf32>
      tpu.vector_store %arg20[%c8, %c0_82], %188 {strides = array<i32>} : memref<24x32xf32, #tpu.memory_space<vmem>>, vector<8x32xf32>,
      %c0_83 = arith.constant 0 : index
      %c0_84 = arith.constant 0 : index
      %c0_85 = arith.constant 0 : index
      %190 = vector.load %arg4[%c0_83, %c0_84, %c0_85] : memref<1x8x24xf32, #tpu.memory_space<vmem>>, vector<1x8x24xf32>
      %191 = vector.shape_cast %190 : vector<1x8x24xf32> to vector<8x24xf32>
      %c0_86 = arith.constant 0 : index
      %c0_87 = arith.constant 0 : index
      %192 = vector.load %arg5[%c0_86, %c0_87] : memref<24x32xf32, #tpu.memory_space<vmem>>, vector<24x32xf32>
      %cst_88 = arith.constant dense<0.000000e+00> : vector<8x32xf32>
      %193 = tpu.matmul %191, %192, %cst_88 {dimension_numbers = #tpu.dot_dimension_numbers<[1], [0], [0], [1], [0, 0, 1, 1], [], []>} : vector<8x24xf32>, vector<24x32xf32>, vector<8x32xf32> -> vector<8x32xf32>
      %c0_89 = arith.constant 0 : index
      %c0_90 = arith.constant 0 : index
      %194 = vector.load %arg6[%c0_89, %c0_90] : memref<1x32xf32, #tpu.memory_space<vmem>>, vector<1x32xf32>
      %195 = vector.broadcast %194 : vector<1x32xf32> to vector<8x32xf32>
      %196 = arith.addf %193, %195 : vector<8x32xf32>
      %c16 = arith.constant 16 : index
      %c0_91 = arith.constant 0 : index
      %197 = vector.load %arg20[%c16, %c0_91] : memref<24x32xf32, #tpu.memory_space<vmem>>, vector<8x32xf32>
      tpu.vector_store %arg20[%c16, %c0_91], %196 {strides = array<i32>} : memref<24x32xf32, #tpu.memory_space<vmem>>, vector<8x32xf32>,
    } else {
    }
    %c0 = arith.constant 0 : index
    %c0_1 = arith.constant 0 : index
    %3 = vector.load %arg20[%c0, %c0_1] : memref<24x32xf32, #tpu.memory_space<vmem>>, vector<24x32xf32>
    %4 = arith.truncf %3 : vector<24x32xf32> to vector<24x32xbf16>
    %c0_2 = arith.constant 0 : index
    %c0_3 = arith.constant 0 : index
    %c0_4 = arith.constant 0 : index
    %5 = vector.load %arg7[%c0_2, %c0_3, %c0_4] : memref<1x32x96xbf16, #tpu.memory_space<vmem>>, vector<1x32x96xbf16>
    %6 = vector.shape_cast %5 : vector<1x32x96xbf16> to vector<32x96xbf16>
    %cst = arith.constant dense<0.000000e+00> : vector<24x96xf32>
    %7 = tpu.matmul %4, %6, %cst {dimension_numbers = #tpu.dot_dimension_numbers<[1], [0], [0], [1], [0, 0, 1, 1], [], []>} : vector<24x32xbf16>, vector<32x96xbf16>, vector<24x96xf32> -> vector<24x96xf32>
    %c0_5 = arith.constant 0 : index
    %c0_6 = arith.constant 0 : index
    %c0_7 = arith.constant 0 : index
    %8 = vector.load %arg8[%c0_5, %c0_6, %c0_7] : memref<1x1x96xf32, #tpu.memory_space<vmem>>, vector<1x1x96xf32>
    %9 = vector.shape_cast %8 : vector<1x1x96xf32> to vector<1x96xf32>
    %10 = vector.broadcast %9 : vector<1x96xf32> to vector<24x96xf32>
    %11 = arith.addf %7, %10 : vector<24x96xf32>
    %12 = vector.extract_strided_slice %11 {offsets = [0, 0], sizes = [24, 8], strides = [1, 1]} : vector<24x96xf32> to vector<24x8xf32>
    %13 = vector.extract_strided_slice %11 {offsets = [0, 32], sizes = [24, 8], strides = [1, 1]} : vector<24x96xf32> to vector<24x8xf32>
    %14 = vector.extract_strided_slice %11 {offsets = [0, 64], sizes = [24, 8], strides = [1, 1]} : vector<24x96xf32> to vector<24x8xf32>
    %15 = arith.truncf %12 : vector<24x8xf32> to vector<24x8xbf16>
    %16 = arith.truncf %13 : vector<24x8xf32> to vector<24x8xbf16>
    %cst_8 = arith.constant dense<0.000000e+00> : vector<24x24xf32>
    %17 = tpu.matmul %15, %16, %cst_8 {dimension_numbers = #tpu.dot_dimension_numbers<[1], [1], [0], [0], [0, 0, 1, 0], [], []>} : vector<24x8xbf16>, vector<24x8xbf16>, vector<24x24xf32> -> vector<24x24xf32>
    %cst_9 = arith.constant dense<0xFF800000> : vector<24xf32>
    %18 = vector.multi_reduction <maximumf>, %17, %cst_9 [1] : vector<24x24xf32> to vector<24xf32>
    %19 = vector.shape_cast %18 : vector<24xf32> to vector<24x1xf32>
    %20 = vector.broadcast %19 : vector<24x1xf32> to vector<24x24xf32>
    %21 = arith.subf %17, %20 : vector<24x24xf32>
    %22 = math.exp %21 : vector<24x24xf32>
    %cst_10 = arith.constant dense<0.000000e+00> : vector<24xf32>
    %23 = vector.multi_reduction <add>, %22, %cst_10 [1] : vector<24x24xf32> to vector<24xf32>
    %24 = vector.shape_cast %23 : vector<24xf32> to vector<24x1xf32>
    %25 = tpu.reciprocal %24 {approx = true} : vector<24x1xf32> -> vector<24x1xf32>
    %26 = vector.broadcast %25 : vector<24x1xf32> to vector<24x24xf32>
    %27 = arith.mulf %22, %26 : vector<24x24xf32>
    %28 = arith.truncf %27 : vector<24x24xf32> to vector<24x24xbf16>
    %29 = arith.truncf %14 : vector<24x8xf32> to vector<24x8xbf16>
    %cst_11 = arith.constant dense<0.000000e+00> : vector<24x8xf32>
    %30 = tpu.matmul %28, %29, %cst_11 {dimension_numbers = #tpu.dot_dimension_numbers<[1], [0], [0], [1], [0, 0, 1, 1], [], []>} : vector<24x24xbf16>, vector<24x8xbf16>, vector<24x8xf32> -> vector<24x8xf32>
    %31 = vector.extract_strided_slice %11 {offsets = [0, 8], sizes = [24, 8], strides = [1, 1]} : vector<24x96xf32> to vector<24x8xf32>
    %32 = vector.extract_strided_slice %11 {offsets = [0, 40], sizes = [24, 8], strides = [1, 1]} : vector<24x96xf32> to vector<24x8xf32>
    %33 = vector.extract_strided_slice %11 {offsets = [0, 72], sizes = [24, 8], strides = [1, 1]} : vector<24x96xf32> to vector<24x8xf32>
    %34 = arith.truncf %31 : vector<24x8xf32> to vector<24x8xbf16>
    %35 = arith.truncf %32 : vector<24x8xf32> to vector<24x8xbf16>
    %cst_12 = arith.constant dense<0.000000e+00> : vector<24x24xf32>
    %36 = tpu.matmul %34, %35, %cst_12 {dimension_numbers = #tpu.dot_dimension_numbers<[1], [1], [0], [0], [0, 0, 1, 0], [], []>} : vector<24x8xbf16>, vector<24x8xbf16>, vector<24x24xf32> -> vector<24x24xf32>
    %cst_13 = arith.constant dense<0xFF800000> : vector<24xf32>
    %37 = vector.multi_reduction <maximumf>, %36, %cst_13 [1] : vector<24x24xf32> to vector<24xf32>
    %38 = vector.shape_cast %37 : vector<24xf32> to vector<24x1xf32>
    %39 = vector.broadcast %38 : vector<24x1xf32> to vector<24x24xf32>
    %40 = arith.subf %36, %39 : vector<24x24xf32>
    %41 = math.exp %40 : vector<24x24xf32>
    %cst_14 = arith.constant dense<0.000000e+00> : vector<24xf32>
    %42 = vector.multi_reduction <add>, %41, %cst_14 [1] : vector<24x24xf32> to vector<24xf32>
    %43 = vector.shape_cast %42 : vector<24xf32> to vector<24x1xf32>
    %44 = tpu.reciprocal %43 {approx = true} : vector<24x1xf32> -> vector<24x1xf32>
    %45 = vector.broadcast %44 : vector<24x1xf32> to vector<24x24xf32>
    %46 = arith.mulf %41, %45 : vector<24x24xf32>
    %47 = arith.truncf %46 : vector<24x24xf32> to vector<24x24xbf16>
    %48 = arith.truncf %33 : vector<24x8xf32> to vector<24x8xbf16>
    %cst_15 = arith.constant dense<0.000000e+00> : vector<24x8xf32>
    %49 = tpu.matmul %47, %48, %cst_15 {dimension_numbers = #tpu.dot_dimension_numbers<[1], [0], [0], [1], [0, 0, 1, 1], [], []>} : vector<24x24xbf16>, vector<24x8xbf16>, vector<24x8xf32> -> vector<24x8xf32>
    %50 = vector.extract_strided_slice %11 {offsets = [0, 16], sizes = [24, 8], strides = [1, 1]} : vector<24x96xf32> to vector<24x8xf32>
    %51 = vector.extract_strided_slice %11 {offsets = [0, 48], sizes = [24, 8], strides = [1, 1]} : vector<24x96xf32> to vector<24x8xf32>
    %52 = vector.extract_strided_slice %11 {offsets = [0, 80], sizes = [24, 8], strides = [1, 1]} : vector<24x96xf32> to vector<24x8xf32>
    %53 = arith.truncf %50 : vector<24x8xf32> to vector<24x8xbf16>
    %54 = arith.truncf %51 : vector<24x8xf32> to vector<24x8xbf16>
    %cst_16 = arith.constant dense<0.000000e+00> : vector<24x24xf32>
    %55 = tpu.matmul %53, %54, %cst_16 {dimension_numbers = #tpu.dot_dimension_numbers<[1], [1], [0], [0], [0, 0, 1, 0], [], []>} : vector<24x8xbf16>, vector<24x8xbf16>, vector<24x24xf32> -> vector<24x24xf32>
    %cst_17 = arith.constant dense<0xFF800000> : vector<24xf32>
    %56 = vector.multi_reduction <maximumf>, %55, %cst_17 [1] : vector<24x24xf32> to vector<24xf32>
    %57 = vector.shape_cast %56 : vector<24xf32> to vector<24x1xf32>
    %58 = vector.broadcast %57 : vector<24x1xf32> to vector<24x24xf32>
    %59 = arith.subf %55, %58 : vector<24x24xf32>
    %60 = math.exp %59 : vector<24x24xf32>
    %cst_18 = arith.constant dense<0.000000e+00> : vector<24xf32>
    %61 = vector.multi_reduction <add>, %60, %cst_18 [1] : vector<24x24xf32> to vector<24xf32>
    %62 = vector.shape_cast %61 : vector<24xf32> to vector<24x1xf32>
    %63 = tpu.reciprocal %62 {approx = true} : vector<24x1xf32> -> vector<24x1xf32>
    %64 = vector.broadcast %63 : vector<24x1xf32> to vector<24x24xf32>
    %65 = arith.mulf %60, %64 : vector<24x24xf32>
    %66 = arith.truncf %65 : vector<24x24xf32> to vector<24x24xbf16>
    %67 = arith.truncf %52 : vector<24x8xf32> to vector<24x8xbf16>
    %cst_19 = arith.constant dense<0.000000e+00> : vector<24x8xf32>
    %68 = tpu.matmul %66, %67, %cst_19 {dimension_numbers = #tpu.dot_dimension_numbers<[1], [0], [0], [1], [0, 0, 1, 1], [], []>} : vector<24x24xbf16>, vector<24x8xbf16>, vector<24x8xf32> -> vector<24x8xf32>
    %69 = vector.extract_strided_slice %11 {offsets = [0, 24], sizes = [24, 8], strides = [1, 1]} : vector<24x96xf32> to vector<24x8xf32>
    %70 = vector.extract_strided_slice %11 {offsets = [0, 56], sizes = [24, 8], strides = [1, 1]} : vector<24x96xf32> to vector<24x8xf32>
    %71 = vector.extract_strided_slice %11 {offsets = [0, 88], sizes = [24, 8], strides = [1, 1]} : vector<24x96xf32> to vector<24x8xf32>
    %72 = arith.truncf %69 : vector<24x8xf32> to vector<24x8xbf16>
    %73 = arith.truncf %70 : vector<24x8xf32> to vector<24x8xbf16>
    %cst_20 = arith.constant dense<0.000000e+00> : vector<24x24xf32>
    %74 = tpu.matmul %72, %73, %cst_20 {dimension_numbers = #tpu.dot_dimension_numbers<[1], [1], [0], [0], [0, 0, 1, 0], [], []>} : vector<24x8xbf16>, vector<24x8xbf16>, vector<24x24xf32> -> vector<24x24xf32>
    %cst_21 = arith.constant dense<0xFF800000> : vector<24xf32>
    %75 = vector.multi_reduction <maximumf>, %74, %cst_21 [1] : vector<24x24xf32> to vector<24xf32>
    %76 = vector.shape_cast %75 : vector<24xf32> to vector<24x1xf32>
    %77 = vector.broadcast %76 : vector<24x1xf32> to vector<24x24xf32>
    %78 = arith.subf %74, %77 : vector<24x24xf32>
    %79 = math.exp %78 : vector<24x24xf32>
    %cst_22 = arith.constant dense<0.000000e+00> : vector<24xf32>
    %80 = vector.multi_reduction <add>, %79, %cst_22 [1] : vector<24x24xf32> to vector<24xf32>
    %81 = vector.shape_cast %80 : vector<24xf32> to vector<24x1xf32>
    %82 = tpu.reciprocal %81 {approx = true} : vector<24x1xf32> -> vector<24x1xf32>
    %83 = vector.broadcast %82 : vector<24x1xf32> to vector<24x24xf32>
    %84 = arith.mulf %79, %83 : vector<24x24xf32>
    %85 = arith.truncf %84 : vector<24x24xf32> to vector<24x24xbf16>
    %86 = arith.truncf %71 : vector<24x8xf32> to vector<24x8xbf16>
    %cst_23 = arith.constant dense<0.000000e+00> : vector<24x8xf32>
    %87 = tpu.matmul %85, %86, %cst_23 {dimension_numbers = #tpu.dot_dimension_numbers<[1], [0], [0], [1], [0, 0, 1, 1], [], []>} : vector<24x24xbf16>, vector<24x8xbf16>, vector<24x8xf32> -> vector<24x8xf32>
    %88 = tpu.concatenate %30, %49, %68, %87 in 1 : vector<24x8xf32>, vector<24x8xf32>, vector<24x8xf32>, vector<24x8xf32> -> vector<24x32xf32>
    %89 = arith.truncf %88 : vector<24x32xf32> to vector<24x32xbf16>
    %c0_24 = arith.constant 0 : index
    %c0_25 = arith.constant 0 : index
    %c0_26 = arith.constant 0 : index
    %90 = vector.load %arg9[%c0_24, %c0_25, %c0_26] : memref<1x32x32xbf16, #tpu.memory_space<vmem>>, vector<1x32x32xbf16>
    %91 = vector.shape_cast %90 : vector<1x32x32xbf16> to vector<32x32xbf16>
    %cst_27 = arith.constant dense<0.000000e+00> : vector<24x32xf32>
    %92 = tpu.matmul %89, %91, %cst_27 {dimension_numbers = #tpu.dot_dimension_numbers<[1], [0], [0], [1], [0, 0, 1, 1], [], []>} : vector<24x32xbf16>, vector<32x32xbf16>, vector<24x32xf32> -> vector<24x32xf32>
    %c0_28 = arith.constant 0 : index
    %c0_29 = arith.constant 0 : index
    %c0_30 = arith.constant 0 : index
    %93 = vector.load %arg10[%c0_28, %c0_29, %c0_30] : memref<1x1x32xf32, #tpu.memory_space<vmem>>, vector<1x1x32xf32>
    %94 = vector.shape_cast %93 : vector<1x1x32xf32> to vector<1x32xf32>
    %95 = vector.broadcast %94 : vector<1x32xf32> to vector<24x32xf32>
    %96 = arith.addf %92, %95 : vector<24x32xf32>
    %c0_31 = arith.constant 0 : index
    %c0_32 = arith.constant 0 : index
    %c0_33 = arith.constant 0 : index
    %97 = vector.load %arg11[%c0_31, %c0_32, %c0_33] : memref<1x1x32xf32, #tpu.memory_space<vmem>>, vector<1x1x32xf32>
    %98 = vector.shape_cast %97 : vector<1x1x32xf32> to vector<1x32xf32>
    %c0_34 = arith.constant 0 : index
    %c0_35 = arith.constant 0 : index
    %c0_36 = arith.constant 0 : index
    %99 = vector.load %arg12[%c0_34, %c0_35, %c0_36] : memref<1x1x32xf32, #tpu.memory_space<vmem>>, vector<1x1x32xf32>
    %100 = vector.shape_cast %99 : vector<1x1x32xf32> to vector<1x32xf32>
    %101 = arith.addf %96, %3 : vector<24x32xf32>
    %cst_37 = arith.constant dense<0.000000e+00> : vector<24xf32>
    %102 = vector.multi_reduction <add>, %101, %cst_37 [1] : vector<24x32xf32> to vector<24xf32>
    %103 = vector.shape_cast %102 : vector<24xf32> to vector<24x1xf32>
    %cst_38 = arith.constant 3.200000e+01 : f32
    %104 = vector.broadcast %cst_38 : f32 to vector<24x1xf32>
    %105 = arith.divf %103, %104 : vector<24x1xf32>
    %106 = vector.broadcast %105 : vector<24x1xf32> to vector<24x32xf32>
    %107 = arith.subf %101, %106 : vector<24x32xf32>
    %108 = arith.mulf %107, %107 : vector<24x32xf32>
    %cst_39 = arith.constant dense<0.000000e+00> : vector<24xf32>
    %109 = vector.multi_reduction <add>, %108, %cst_39 [1] : vector<24x32xf32> to vector<24xf32>
    %110 = vector.shape_cast %109 : vector<24xf32> to vector<24x1xf32>
    %cst_40 = arith.constant 3.200000e+01 : f32
    %111 = vector.broadcast %cst_40 : f32 to vector<24x1xf32>
    %112 = arith.divf %110, %111 : vector<24x1xf32>
    %113 = vector.broadcast %105 : vector<24x1xf32> to vector<24x32xf32>
    %114 = arith.subf %101, %113 : vector<24x32xf32>
    %cst_41 = arith.constant 9.99999996E-13 : f32
    %115 = vector.broadcast %cst_41 : f32 to vector<24x1xf32>
    %116 = arith.addf %112, %115 : vector<24x1xf32>
    %117 = math.rsqrt %116 : vector<24x1xf32>
    %118 = vector.broadcast %117 : vector<24x1xf32> to vector<24x32xf32>
    %119 = arith.mulf %114, %118 : vector<24x32xf32>
    %120 = vector.broadcast %98 : vector<1x32xf32> to vector<24x32xf32>
    %121 = arith.mulf %119, %120 : vector<24x32xf32>
    %122 = vector.broadcast %100 : vector<1x32xf32> to vector<24x32xf32>
    %123 = arith.addf %121, %122 : vector<24x32xf32>
    %124 = arith.truncf %123 : vector<24x32xf32> to vector<24x32xbf16>
    %c0_42 = arith.constant 0 : index
    %c0_43 = arith.constant 0 : index
    %c0_44 = arith.constant 0 : index
    %125 = vector.load %arg13[%c0_42, %c0_43, %c0_44] : memref<1x32x64xbf16, #tpu.memory_space<vmem>>, vector<1x32x64xbf16>
    %126 = vector.shape_cast %125 : vector<1x32x64xbf16> to vector<32x64xbf16>
    %cst_45 = arith.constant dense<0.000000e+00> : vector<24x64xf32>
    %127 = tpu.matmul %124, %126, %cst_45 {dimension_numbers = #tpu.dot_dimension_numbers<[1], [0], [0], [1], [0, 0, 1, 1], [], []>} : vector<24x32xbf16>, vector<32x64xbf16>, vector<24x64xf32> -> vector<24x64xf32>
    %c0_46 = arith.constant 0 : index
    %c0_47 = arith.constant 0 : index
    %c0_48 = arith.constant 0 : index
    %128 = vector.load %arg14[%c0_46, %c0_47, %c0_48] : memref<1x1x64xf32, #tpu.memory_space<vmem>>, vector<1x1x64xf32>
    %129 = vector.shape_cast %128 : vector<1x1x64xf32> to vector<1x64xf32>
    %130 = vector.broadcast %129 : vector<1x64xf32> to vector<24x64xf32>
    %131 = arith.addf %127, %130 : vector<24x64xf32>
    %cst_49 = arith.constant 5.000000e-01 : f32
    %132 = vector.broadcast %cst_49 : f32 to vector<24x64xf32>
    %133 = arith.mulf %132, %131 : vector<24x64xf32>
    %cst_50 = arith.constant 4.471500e-02 : f32
    %134 = vector.broadcast %cst_50 : f32 to vector<24x64xf32>
    %135 = arith.mulf %134, %131 : vector<24x64xf32>
    %136 = arith.mulf %135, %131 : vector<24x64xf32>
    %137 = arith.mulf %136, %131 : vector<24x64xf32>
    %138 = arith.addf %131, %137 : vector<24x64xf32>
    %cst_51 = arith.constant 0.797884583 : f32
    %139 = vector.broadcast %cst_51 : f32 to vector<24x64xf32>
    %140 = arith.mulf %139, %138 : vector<24x64xf32>
    %141 = math.tanh %140 : vector<24x64xf32>
    %cst_52 = arith.constant 1.000000e+00 : f32
    %142 = vector.broadcast %cst_52 : f32 to vector<24x64xf32>
    %143 = arith.addf %142, %141 : vector<24x64xf32>
    %144 = arith.mulf %133, %143 : vector<24x64xf32>
    %145 = arith.truncf %144 : vector<24x64xf32> to vector<24x64xbf16>
    %c0_53 = arith.constant 0 : index
    %c0_54 = arith.constant 0 : index
    %c0_55 = arith.constant 0 : index
    %146 = vector.load %arg15[%c0_53, %c0_54, %c0_55] : memref<1x64x32xbf16, #tpu.memory_space<vmem>>, vector<1x64x32xbf16>
    %147 = vector.shape_cast %146 : vector<1x64x32xbf16> to vector<64x32xbf16>
    %cst_56 = arith.constant dense<0.000000e+00> : vector<24x32xf32>
    %148 = tpu.matmul %145, %147, %cst_56 {dimension_numbers = #tpu.dot_dimension_numbers<[1], [0], [0], [1], [0, 0, 1, 1], [], []>} : vector<24x64xbf16>, vector<64x32xbf16>, vector<24x32xf32> -> vector<24x32xf32>
    %c0_57 = arith.constant 0 : index
    %c0_58 = arith.constant 0 : index
    %c0_59 = arith.constant 0 : index
    %149 = vector.load %arg16[%c0_57, %c0_58, %c0_59] : memref<1x1x32xf32, #tpu.memory_space<vmem>>, vector<1x1x32xf32>
    %150 = vector.shape_cast %149 : vector<1x1x32xf32> to vector<1x32xf32>
    %151 = vector.broadcast %150 : vector<1x32xf32> to vector<24x32xf32>
    %152 = arith.addf %148, %151 : vector<24x32xf32>
    %c0_60 = arith.constant 0 : index
    %c0_61 = arith.constant 0 : index
    %c0_62 = arith.constant 0 : index
    %153 = vector.load %arg17[%c0_60, %c0_61, %c0_62] : memref<1x1x32xf32, #tpu.memory_space<vmem>>, vector<1x1x32xf32>
    %154 = vector.shape_cast %153 : vector<1x1x32xf32> to vector<1x32xf32>
    %c0_63 = arith.constant 0 : index
    %c0_64 = arith.constant 0 : index
    %c0_65 = arith.constant 0 : index
    %155 = vector.load %arg18[%c0_63, %c0_64, %c0_65] : memref<1x1x32xf32, #tpu.memory_space<vmem>>, vector<1x1x32xf32>
    %156 = vector.shape_cast %155 : vector<1x1x32xf32> to vector<1x32xf32>
    %157 = arith.addf %152, %123 : vector<24x32xf32>
    %cst_66 = arith.constant dense<0.000000e+00> : vector<24xf32>
    %158 = vector.multi_reduction <add>, %157, %cst_66 [1] : vector<24x32xf32> to vector<24xf32>
    %159 = vector.shape_cast %158 : vector<24xf32> to vector<24x1xf32>
    %cst_67 = arith.constant 3.200000e+01 : f32
    %160 = vector.broadcast %cst_67 : f32 to vector<24x1xf32>
    %161 = arith.divf %159, %160 : vector<24x1xf32>
    %162 = vector.broadcast %161 : vector<24x1xf32> to vector<24x32xf32>
    %163 = arith.subf %157, %162 : vector<24x32xf32>
    %164 = arith.mulf %163, %163 : vector<24x32xf32>
    %cst_68 = arith.constant dense<0.000000e+00> : vector<24xf32>
    %165 = vector.multi_reduction <add>, %164, %cst_68 [1] : vector<24x32xf32> to vector<24xf32>
    %166 = vector.shape_cast %165 : vector<24xf32> to vector<24x1xf32>
    %cst_69 = arith.constant 3.200000e+01 : f32
    %167 = vector.broadcast %cst_69 : f32 to vector<24x1xf32>
    %168 = arith.divf %166, %167 : vector<24x1xf32>
    %169 = vector.broadcast %161 : vector<24x1xf32> to vector<24x32xf32>
    %170 = arith.subf %157, %169 : vector<24x32xf32>
    %cst_70 = arith.constant 9.99999996E-13 : f32
    %171 = vector.broadcast %cst_70 : f32 to vector<24x1xf32>
    %172 = arith.addf %168, %171 : vector<24x1xf32>
    %173 = math.rsqrt %172 : vector<24x1xf32>
    %174 = vector.broadcast %173 : vector<24x1xf32> to vector<24x32xf32>
    %175 = arith.mulf %170, %174 : vector<24x32xf32>
    %176 = vector.broadcast %154 : vector<1x32xf32> to vector<24x32xf32>
    %177 = arith.mulf %175, %176 : vector<24x32xf32>
    %178 = vector.broadcast %156 : vector<1x32xf32> to vector<24x32xf32>
    %179 = arith.addf %177, %178 : vector<24x32xf32>
    %c0_71 = arith.constant 0 : index
    %c0_72 = arith.constant 0 : index
    %180 = vector.load %arg20[%c0_71, %c0_72] : memref<24x32xf32, #tpu.memory_space<vmem>>, vector<24x32xf32>
    tpu.vector_store %arg20[%c0_71, %c0_72], %179 {strides = array<i32>} : memref<24x32xf32, #tpu.memory_space<vmem>>, vector<24x32xf32>,
    %c1_i32 = arith.constant 1 : i32
    %181 = arith.cmpi eq, %arg1, %c1_i32 : i32
    %182 = arith.extui %181 : i1 to i32
    %c0_i32_73 = arith.constant 0 : i32
    %183 = arith.cmpi ne, %182, %c0_i32_73 : i32
    scf.if %183 {
      %c0_74 = arith.constant 0 : index
      %c0_75 = arith.constant 0 : index
      %c0_76 = arith.constant 0 : index
      %184 = vector.load %arg19[%c0_74, %c0_75, %c0_76] : memref<1x24x32xf32, #tpu.memory_space<vmem>>, vector<1x24x32xf32>
      %185 = vector.shape_cast %184 : vector<1x24x32xf32> to vector<24x32xf32>
      %186 = vector.shape_cast %179 : vector<24x32xf32> to vector<1x24x32xf32>
      tpu.vector_store %arg19[%c0_74, %c0_75, %c0_76], %186 {strides = array<i32>} : memref<1x24x32xf32, #tpu.memory_space<vmem>>, vector<1x24x32xf32>,
    } else {
    }
    return
  }
  func.func @transform_0(%arg0: i32, %arg1: i32) -> (i32, i32, i32) {
    %c0_i32 = arith.constant 0 : i32
    %c0_i32_0 = arith.constant 0 : i32
    %c0_i32_1 = arith.constant 0 : i32
    return %arg0, %c0_i32, %c0_i32_0 : i32, i32, i32
  }
  func.func @transform_1(%arg0: i32, %arg1: i32) -> (i32, i32, i32) {
    %c0_i32 = arith.constant 0 : i32
    %c0_i32_0 = arith.constant 0 : i32
    %c0_i32_1 = arith.constant 0 : i32
    return %arg0, %c0_i32, %c0_i32_0 : i32, i32, i32
  }
  func.func @transform_2(%arg0: i32, %arg1: i32) -> (i32, i32, i32) {
    %c0_i32 = arith.constant 0 : i32
    %c0_i32_0 = arith.constant 0 : i32
    %c0_i32_1 = arith.constant 0 : i32
    return %arg0, %c0_i32, %c0_i32_0 : i32, i32, i32
  }
  func.func @transform_3(%arg0: i32, %arg1: i32) -> (i32, i32) {
    %c0_i32 = arith.constant 0 : i32
    %c0_i32_0 = arith.constant 0 : i32
    %c0_i32_1 = arith.constant 0 : i32
    return %c0_i32, %c0_i32_0 : i32, i32
  }
  func.func @transform_4(%arg0: i32, %arg1: i32) -> (i32, i32) {
    %c0_i32 = arith.constant 0 : i32
    %c0_i32_0 = arith.constant 0 : i32
    %c0_i32_1 = arith.constant 0 : i32
    return %c0_i32, %c0_i32_0 : i32, i32
  }
  func.func @transform_5(%arg0: i32, %arg1: i32) -> (i32, i32, i32) {
    %c0_i32 = arith.constant 0 : i32
    %c0_i32_0 = arith.constant 0 : i32
    %c0_i32_1 = arith.constant 0 : i32
    return %arg1, %c0_i32, %c0_i32_0 : i32, i32, i32
  }
  func.func @transform_6(%arg0: i32, %arg1: i32) -> (i32, i32, i32) {
    %c0_i32 = arith.constant 0 : i32
    %c0_i32_0 = arith.constant 0 : i32
    %c0_i32_1 = arith.constant 0 : i32
    return %arg1, %c0_i32, %c0_i32_0 : i32, i32, i32
  }
  func.func @transform_7(%arg0: i32, %arg1: i32) -> (i32, i32, i32) {
    %c0_i32 = arith.constant 0 : i32
    %c0_i32_0 = arith.constant 0 : i32
    %c0_i32_1 = arith.constant 0 : i32
    return %arg1, %c0_i32, %c0_i32_0 : i32, i32, i32
  }
  func.func @transform_8(%arg0: i32, %arg1: i32) -> (i32, i32, i32) {
    %c0_i32 = arith.constant 0 : i32
    %c0_i32_0 = arith.constant 0 : i32
    %c0_i32_1 = arith.constant 0 : i32
    return %arg1, %c0_i32, %c0_i32_0 : i32, i32, i32
  }
  func.func @transform_9(%arg0: i32, %arg1: i32) -> (i32, i32, i32) {
    %c0_i32 = arith.constant 0 : i32
    %c0_i32_0 = arith.constant 0 : i32
    %c0_i32_1 = arith.constant 0 : i32
    return %arg1, %c0_i32, %c0_i32_0 : i32, i32, i32
  }
  func.func @transform_10(%arg0: i32, %arg1: i32) -> (i32, i32, i32) {
    %c0_i32 = arith.constant 0 : i32
    %c0_i32_0 = arith.constant 0 : i32
    %c0_i32_1 = arith.constant 0 : i32
    return %arg1, %c0_i32, %c0_i32_0 : i32, i32, i32
  }
  func.func @transform_11(%arg0: i32, %arg1: i32) -> (i32, i32, i32) {
    %c0_i32 = arith.constant 0 : i32
    %c0_i32_0 = arith.constant 0 : i32
    %c0_i32_1 = arith.constant 0 : i32
    return %arg1, %c0_i32, %c0_i32_0 : i32, i32, i32
  }
  func.func @transform_12(%arg0: i32, %arg1: i32) -> (i32, i32, i32) {
    %c0_i32 = arith.constant 0 : i32
    %c0_i32_0 = arith.constant 0 : i32
    %c0_i32_1 = arith.constant 0 : i32
    return %arg1, %c0_i32, %c0_i32_0 : i32, i32, i32
  }
  func.func @transform_13(%arg0: i32, %arg1: i32) -> (i32, i32, i32) {
    %c0_i32 = arith.constant 0 : i32
    %c0_i32_0 = arith.constant 0 : i32
    %c0_i32_1 = arith.constant 0 : i32
    return %arg1, %c0_i32, %c0_i32_0 : i32, i32, i32
  }
  func.func @transform_14(%arg0: i32, %arg1: i32) -> (i32, i32, i32) {
    %c0_i32 = arith.constant 0 : i32
    %c0_i32_0 = arith.constant 0 : i32
    %c0_i32_1 = arith.constant 0 : i32
    return %arg1, %c0_i32, %c0_i32_0 : i32, i32, i32
  }
  func.func @transform_15(%arg0: i32, %arg1: i32) -> (i32, i32, i32) {
    %c0_i32 = arith.constant 0 : i32
    %c0_i32_0 = arith.constant 0 : i32
    %c0_i32_1 = arith.constant 0 : i32
    return %arg1, %c0_i32, %c0_i32_0 : i32, i32, i32
  }
  func.func @transform_16(%arg0: i32, %arg1: i32) -> (i32, i32, i32) {
    %c0_i32 = arith.constant 0 : i32
    %c0_i32_0 = arith.constant 0 : i32
    %c0_i32_1 = arith.constant 0 : i32
    return %arg1, %c0_i32, %c0_i32_0 : i32, i32, i32
  }
  func.func @transform_17(%arg0: i32, %arg1: i32) -> (i32, i32, i32) {
    %c0_i32 = arith.constant 0 : i32
    %c0_i32_0 = arith.constant 0 : i32
    %c0_i32_1 = arith.constant 0 : i32
    return %arg0, %c0_i32, %c0_i32_0 : i32, i32, i32
  }
}

</mosaic_0001>

<bundles_post_ra>
// kernel: mixed_model_forward.1
= control target key start
LH: loop header
LB: loop body
LE: loop exit
PB: predicated region body
PF: predicated region fallthrough
CT: control target
= control target key end

     0   :  { %s4592_s0 = inlined_call_operand.vmem [shape: f32[2,8,32], index: 0, kind: input, shape index: {}]   ;;  %s4593_s1 = inlined_call_operand.hbm [shape: f32[2,8,32], index: 1, kind: input, shape index: {}]   ;;  %s4594_s2 = inlined_call_operand.hbm [shape: f32[2,8,24], index: 2, kind: input, shape index: {}]   ;;  %s4595_s3 = inlined_call_operand.hbm [shape: f32[24,32], index: 3, kind: input, shape index: {}]   ;;  %s4596_s4 = inlined_call_operand.vmem [shape: f32[1,32], index: 4, kind: input, shape index: {}]   ;;  %s4597_s5 = inlined_call_operand.vmem [shape: bf16[2,32,96], index: 5, kind: input, shape index: {}]   ;;  %s4598_s6 = inlined_call_operand.hbm [shape: f32[2,1,96], index: 6, kind: input, shape index: {}]   ;;  %s4599_s7 = inlined_call_operand.vmem [shape: bf16[2,32,32], index: 7, kind: input, shape index: {}]   ;;  %s4600_s8 = inlined_call_operand.hbm [shape: f32[2,1,32], index: 8, kind: input, shape index: {}]   ;;  %s4601_s9 = inlined_call_operand.hbm [shape: f32[2,1,32], index: 9, kind: input, shape index: {}]   ;;  %s4602_s10 = inlined_call_operand.hbm [shape: f32[2,1,32], index: 10, kind: input, shape index: {}]   ;;  %s4603_s11 = inlined_call_operand.vmem [shape: bf16[2,32,64], index: 11, kind: input, shape index: {}]   ;;  %s4604_s12 = inlined_call_operand.hbm [shape: f32[2,1,64], index: 12, kind: input, shape index: {}]   ;;  %s4605_s13 = inlined_call_operand.vmem [shape: bf16[2,64,32], index: 13, kind: input, shape index: {}]   ;;  %s4606_s14 = inlined_call_operand.hbm [shape: f32[2,1,32], index: 14, kind: input, shape index: {}]   ;;  %s4607_s15 = inlined_call_operand.hbm [shape: f32[2,1,32], index: 15, kind: input, shape index: {}]   ;;  %s4608_s16 = inlined_call_operand.hbm [shape: f32[2,1,32], index: 16, kind: input, shape index: {}]   ;;  %s4609_s17 = inlined_call_operand.hbm [shape: f32[2,24,32], index: 17, kind: output, shape index: {}]  }
   0x1   :  { %4637 = sst [smem:[#allocation45_spill]] %s4592_s0 }
   0x2   :  { %4638 = sst [smem:[#allocation46_spill]] %s4593_s1 }
   0x3   :  { %4639 = sst [smem:[#allocation47_spill]] %s4594_s2 }
   0x4   :  { %4640 = sst [smem:[#allocation48_spill]] %s4595_s3 }
   0x5   :  { %4641 = sst [smem:[#allocation49_spill]] %s4596_s4 }
   0x6   :  { %4642 = sst [smem:[#allocation50_spill]] %s4597_s5 }
   0x7   :  { %4643 = sst [smem:[#allocation51_spill]] %s4598_s6 }
   0x8   :  { %4644 = sst [smem:[#allocation52_spill]] %s4599_s7 }
   0x9   :  { %4645 = sst [smem:[#allocation53_spill]] %s4600_s8 }
   0xa   :  { %4646 = sst [smem:[#allocation54_spill]] %s4601_s9 }
   0xb   :  { %4647 = sst [smem:[#allocation55_spill]] %s4602_s10 }
   0xc   :  { %4648 = sst [smem:[#allocation56_spill]] %s4603_s11 }
   0xd   :  { %4649 = sst [smem:[#allocation57_spill]] %s4604_s12 }
   0xe   :  { %4650 = sst [smem:[#allocation58_spill]] %s4605_s13 }
   0xf   :  { %4651 = sst [smem:[#allocation59_spill]] %s4606_s14 }
  0x10   :  { %4652 = sst [smem:[#allocation60_spill]] %s4607_s15 }
  0x11   :  { %4653 = sst [smem:[#allocation61_spill]] %s4608_s16 }
  0x12   :  { %4654 = sst [smem:[#allocation62_spill]] %s4609_s17 }
  0x13   :  { %22 = vsyncpa [#allocation4], 0 }
  0x14   :  { %24 = vsyncpa [#allocation4 + $0x1], 0 }
  0x15   :  { %25 = vsyncpa [#allocation7], 0 }
  0x16   :  { %27 = vsyncpa [#allocation7 + $0x1], 0 }
  0x17   :  { %28 = vsyncpa [#allocation10], 0 }
  0x18   :  { %30 = vsyncpa [#allocation10 + $0x1], 0 }
  0x19   :  { %31 = vsyncpa [#allocation13], 0 }
  0x1a   :  { %33 = vsyncpa [#allocation13 + $0x1], 0 }
  0x1b   :  { %34 = vsyncpa [#allocation16], 0 }
  0x1c   :  { %36 = vsyncpa [#allocation16 + $0x1], 0 }
  0x1d   :  { %37 = vsyncpa [#allocation19], 0 }
  0x1e   :  { %39 = vsyncpa [#allocation19 + $0x1], 0 }
  0x1f   :  { %40 = vsyncpa [#allocation5], 0 }
  0x20   :  { %42 = vsyncpa [#allocation5 + $0x1], 0  ;;  %s3756_s24 = smov 0   ;;  %s3758_s25 = smov 0  }
  0x21   :  { %s3760_s26 = smov 0   ;;  %s3762_s27 = smov 0  }
  0x22   :  { %s3764_s28 = smov 0   ;;  %s3766_s29 = smov 0  }
  0x23   :  { %s3768_s0 = smov 0   ;;  %s3770_s30 = smov 0  }
  0x24   :  { %s3772_s18 = smov 0   ;;  %s3774_s19 = smov 0  }
  0x25   :  { %s3776_s1 = smov 0  }
  0x26 LB: > { %4655 = sst [smem:[#allocation30_spill]] %s3596_s25  ;;  %s3810_s20 = sadd.s32 4294967295, %s3632_s1   ;;  %s3632_s1 = sphi %s3776_s1, %s48_s1   ;;  %s3628_s19 = sphi %s3774_s19, %s4749_s19   ;;  %s3624_s18 = sphi %s3772_s18, %s4748_s18   ;;  %s3620_s30 = sphi %s3770_s30, %s4747_s30   ;;  %s3616_s0 = sphi %s3768_s0, %s4746_s0   ;;  %s3612_s29 = sphi %s3766_s29, %s4745_s29   ;;  %s3608_s28 = sphi %s3764_s28, %s4751_s28   ;;  %s3604_s27 = sphi %s3762_s27, %s4750_s27   ;;  %s3600_s26 = sphi %s3760_s26, %s4743_s26   ;;  %s3596_s25 = sphi %s3758_s25, %s4742_s25   ;;  %s3592_s24 = sphi %s3756_s24, %s4741_s24  }
  0x27   : > { %4656 = sst [smem:[#allocation31_spill]] %s3600_s26  ;;  %p4619_p0 = scmp.eq.s32.totalorder %s3632_s1, 0 }
  0x28   : > { %4657 = sst [smem:[#allocation32_spill]] %s3604_s27  ;;  %p4618_p1 = scmp.eq.s32.totalorder %s3810_s20, 0 }
  0x29   : > { %4658 = sst [smem:[#allocation33_spill]] %s3612_s29  ;;  %p220_p2 = scmp.ne.s32.totalorder %s3600_s26, %s3596_s25 }
  0x2a   : > { %4659 = sst [smem:[#allocation34_spill]] %s3616_s0  ;;  %p226_p3 = scmp.ne.s32.totalorder %s3596_s25, %s3592_s24 }
  0x2b   : > { %4660 = sst [smem:[#allocation35_spill]] %s3620_s30  ;;  %p2628_p4 = scmp.ge.s32.totalorder %s3632_s1, 1 }
  0x2c   : > { %4661 = sst [smem:[#allocation36_spill]] %s3624_s18  ;;  %p222_p5 = por %p220_p2, %p4619_p0 }
  0x2d   : > { %4662 = sst [smem:[#allocation37_spill]] %s3628_s19  ;;  %p523_p6 = scmp.lt.s32.totalorder %s3632_s1, 5 }
  0x2e   : > { %p3823_p7 = por %p226_p3, %p4618_p1  ;;  %s3634_s23 = smov [#allocation8]  }
  0x2f   : > { %p3827_p8 = pnand %p2628_p4, %p523_p6  ;;  %s535_s17 = sshll.u32 %s3634_s23, 4  ;;  %s536_s17 = int_to_ptr.vmem [resolvable:$true] %s535_s17 }
  0x30   : > { %s4663_s21 = scalar_select %p3823_p7, 1, 0 }
  0x31   : > { %s4665_s22 = scalar_select %p3827_p8, 1, 0 }
  0x32   : > { %4664 = sst [smem:[#allocation38_spill]] %s4663_s21  ;;  %p2915_p9 = pneg %p3827_p8 }
  0x33   : > { %4666 = sst [smem:[#allocation39_spill]] %s4665_s22  ;;  %p4617_p11 = scmp.lt.s32.totalorder %s3632_s1, 4 }
  0x34   : > { %p3835_p10 = pnand %p2915_p9, %p4618_p1  ;;  %s3841_s4 = sand.u32 1, %s3632_s1  }
  0x35   : > { %p3845_p12 = pnand %p4617_p11, %p222_p5  ;;  %s4669_s3 = sld [smem:[#allocation48_spill]] }
  0x36   : > { %p3160_p2 = pneg %p3835_p10 }
  0x37   : > { %s4668_s13 = scalar_select %p3845_p12, 1, 0 }
  0x3b   : > { %s3158_s23 = scalar_lea.hbm %s4669_s3, 384 }
  0x3c   : > { %p3159_p13 = scmp.ne.s32.totalorder %s4669_s3, %s3158_s23  ;;  %p3165_p6 = scmp.lt.u32.totalorder %s3158_s23, %s4669_s3 }
  0x3e   : > { %p3161_p3 = pnand %p3160_p2, %p3159_p13 }
  0x40   : > { %p3162_p4 = pneg %p3161_p3 }
  0x42   : > { %p3167_p5 = pnand %p3165_p6, %p3162_p4 }
  0x44   : > { %3170 = shalt.err (!%p3167_p5)
}
  0x45   : > { %s3171_s25 = scalar_lea.vmem %s536_s17, 384  ;;  %p3179_p0 = scmp.lt.s32.totalorder %s536_s17, %s536_s17 }
  0x46   : > { %p3172_p9 = scmp.ne.s32.totalorder %s536_s17, %s3171_s25  ;;  %p3180_p7 = scmp.lt.s32.totalorder %s3171_s25, %s3171_s25 }
  0x48   : > { %p3174_p11 = pnand %p3172_p9, %p3160_p2  ;;  %p3181_p8 = por %p3180_p7, %p3179_p0 }
  0x4a   : > { %p3175_p1 = pneg %p3174_p11 }
  0x4c   : > { %p3182_p12 = pnand %p3181_p8, %p3175_p1 }
  0x4e   : > { %3185 = shalt.err (!%p3182_p12)
}
  0x4f   : > { %s3635_s5 = smov 128   ;;  %s3636_s7 = smov 8  }
  0x50   : > { %2918 = dma.hbm_to_vmem [thread:$0]  (!%p3835_p10), %s4669_s3, 384, %s536_s17, [#allocation7], %s3635_s5, %s3635_s5, %s3636_s7  }
  0x51   : > { %s3866_s30 = sand.u32 1, %s3600_s26   ;;  %s3869_s21 = sshll.u32 %s3624_s18, 4 }
  0x52   : > { %s4670_s6 = sld [smem:[#allocation51_spill]]  ;;  %s606_s24 = scalar_lea.vmem [#allocation9], %s3866_s30 }
  0x53   : > { %s613_s16 = sshll.u32 %s606_s24, 4  ;;  %p4671_p1 = scmp.ne.s32.totalorder %s4668_s13, 0  ;;  %s3878_s16 = int_to_ptr.vmem [resolvable:$true] %s613_s16 }
  0x55   : > { %p3885_p7 = pneg %p4671_p1 }
  0x58   : > { %s3875_s22 = scalar_lea.hbm %s4670_s6, %s3869_s21  ;;  %s3191_s25 = scalar_lea.hbm %s4670_s6, 32 }
  0x59   : > { %s3186_s5 = scalar_lea.hbm %s3875_s22, 16  ;;  %p3192_p11 = scmp.lt.u32.totalorder %s3875_s22, %s4670_s6 }
  0x5a   : > { %p3187_p0 = scmp.ne.s32.totalorder %s3875_s22, %s3186_s5  ;;  %p3193_p12 = scmp.lt.u32.totalorder %s3191_s25, %s3186_s5 }
  0x5b   : > { %p3195_p2 = scmp.lt.u32.totalorder %s3186_s5, %s3875_s22 }
  0x5c   : > { %p3189_p8 = pnand %p3885_p7, %p3187_p0  ;;  %p3194_p13 = por %p3193_p12, %p3192_p11 }
  0x5e   : > { %p3190_p10 = pneg %p3189_p8  ;;  %p3196_p3 = por %p3195_p2, %p3194_p13 }
  0x60   : > { %p3197_p4 = pnand %p3196_p3, %p3190_p10 }
  0x62   : > { %3200 = shalt.err (!%p3197_p4)
}
  0x63   : > { %s3201_s17 = scalar_lea.vmem %s3878_s16, 16  ;;  %s3637_s11 = smov [#allocation9]  }
  0x64   : > { %p3202_p6 = scmp.ne.s32.totalorder %s3878_s16, %s3201_s17  ;;  %s3206_s0 = sshll.u32 %s3637_s11, 4  ;;  %s3207_s0 = int_to_ptr.vmem [resolvable:$false] %s3206_s0 }
  0x65   : > { %s3208_s23 = scalar_lea.vmem %s3207_s0, 32  ;;  %p3209_p0 = scmp.lt.s32.totalorder %s3878_s16, %s3207_s0 }
  0x66   : > { %p3204_p5 = pnand %p3202_p6, %p3885_p7  ;;  %p3210_p8 = scmp.lt.s32.totalorder %s3208_s23, %s3201_s17 }
  0x68   : > { %p3205_p9 = pneg %p3204_p5  ;;  %p3211_p11 = por %p3210_p8, %p3209_p0 }
  0x6a   : > { %p3212_p12 = pnand %p3211_p11, %p3205_p9 }
  0x6c   : > { %3215 = shalt.err (!%p3212_p12)
}
  0x6d   : > { %s4673_s5 = scalar_lea.sflag [#allocation10], %s3841_s4  ;;  %s4674_s9 = sld [smem:[#allocation54_spill]] }
  0x6e   : > { %2928 = dma.hbm_to_vmem [thread:$0]  (!%p4671_p1), %s3875_s22, 16, %s3878_s16, %s4673_s5  }
  0x6f   : > { %s648_s17 = scalar_lea.vmem [#allocation12], %s3866_s30 }
  0x70   : > { %s655_s0 = sshll.u32 %s648_s17, 4  ;;  %s656_s0 = int_to_ptr.vmem [resolvable:$true] %s655_s0 }
  0x73   : > { %s3914_s11 = scalar_lea.hbm %s4674_s9, %s3869_s21  ;;  %s3221_s22 = scalar_lea.hbm %s4674_s9, 32 }
  0x74   : > { %s3216_s3 = scalar_lea.hbm %s3914_s11, 16  ;;  %p3222_p3 = scmp.lt.u32.totalorder %s3914_s11, %s4674_s9 }
  0x75   : > { %p3217_p10 = scmp.ne.s32.totalorder %s3914_s11, %s3216_s3  ;;  %p3223_p4 = scmp.lt.u32.totalorder %s3221_s22, %s3216_s3 }
  0x76   : > { %p3225_p5 = scmp.lt.u32.totalorder %s3216_s3, %s3914_s11 }
  0x77   : > { %p3219_p13 = pnand %p3217_p10, %p3885_p7  ;;  %p3224_p6 = por %p3223_p4, %p3222_p3 }
  0x79   : > { %p3220_p2 = pneg %p3219_p13  ;;  %p3226_p9 = por %p3225_p5, %p3224_p6 }
  0x7b   : > { %p3227_p0 = pnand %p3226_p9, %p3220_p2 }
  0x7d   : > { %3230 = shalt.err (!%p3227_p0)
}
  0x7e   : > { %s3231_s24 = scalar_lea.vmem %s656_s0, 16  ;;  %s3638_s17 = smov [#allocation12]  }
  0x7f   : > { %p3232_p8 = scmp.ne.s32.totalorder %s656_s0, %s3231_s24  ;;  %s3236_s23 = sshll.u32 %s3638_s17, 4  ;;  %s3237_s23 = int_to_ptr.vmem [resolvable:$false] %s3236_s23 }
  0x80   : > { %s3238_s6 = scalar_lea.vmem %s3237_s23, 32  ;;  %p3239_p10 = scmp.lt.s32.totalorder %s656_s0, %s3237_s23 }
  0x81   : > { %p3234_p11 = pnand %p3232_p8, %p3885_p7  ;;  %p3240_p13 = scmp.lt.s32.totalorder %s3238_s6, %s3231_s24 }
  0x83   : > { %p3235_p12 = pneg %p3234_p11  ;;  %p3241_p1 = por %p3240_p13, %p3239_p10 }
  0x85   : > { %p3242_p3 = pnand %p3241_p1, %p3235_p12 }
  0x87   : > { %3245 = shalt.err (!%p3242_p3)
}
  0x88   : > { %p4675_p4 = scmp.ne.s32.totalorder %s4668_s13, 0  ;;  %s4676_s3 = scalar_lea.sflag [#allocation13], %s3841_s4 }
  0x89   : > { %s4677_s12 = sld [smem:[#allocation57_spill]]  ;;  %s690_s23 = scalar_lea.vmem [#allocation15], %s3866_s30 }
  0x8a   : > { %2934 = dma.hbm_to_vmem [thread:$0]  (!%p4675_p4), %s3914_s11, 16, %s656_s0, %s4676_s3  }
  0x8b   : > { %s697_s25 = sshll.u32 %s690_s23, 4  ;;  %s698_s25 = int_to_ptr.vmem [resolvable:$true] %s697_s25 }
  0x8f   : > { %s3941_s5 = scalar_lea.hbm %s4677_s12, %s3869_s21  ;;  %s3251_s0 = scalar_lea.hbm %s4677_s12, 32 }
  0x90   : > { %s3246_s17 = scalar_lea.hbm %s3941_s5, 16  ;;  %p3252_p5 = scmp.lt.u32.totalorder %s3941_s5, %s4677_s12 }
  0x91   : > { %p3247_p1 = scmp.ne.s32.totalorder %s3941_s5, %s3246_s17  ;;  %p3253_p9 = scmp.lt.u32.totalorder %s3251_s0, %s3246_s17 }
  0x92   : > { %p3255_p8 = scmp.lt.u32.totalorder %s3246_s17, %s3941_s5 }
  0x93   : > { %p3249_p2 = pnand %p3247_p1, %p3885_p7  ;;  %p3254_p0 = por %p3253_p9, %p3252_p5 }
  0x95   : > { %p3250_p6 = pneg %p3249_p2  ;;  %p3256_p11 = por %p3255_p8, %p3254_p0 }
  0x97   : > { %p3257_p12 = pnand %p3256_p11, %p3250_p6 }
  0x99   : > { %3260 = shalt.err (!%p3257_p12)
}
  0x9a   : > { %s3261_s22 = scalar_lea.vmem %s698_s25, 16  ;;  %s3639_s23 = smov [#allocation15]  }
  0x9b   : > { %p3262_p10 = scmp.ne.s32.totalorder %s698_s25, %s3261_s22  ;;  %s3266_s24 = sshll.u32 %s3639_s23, 4  ;;  %s3267_s24 = int_to_ptr.vmem [resolvable:$false] %s3266_s24 }
  0x9c   : > { %s3268_s6 = scalar_lea.vmem %s3267_s24, 32  ;;  %p3269_p1 = scmp.lt.s32.totalorder %s698_s25, %s3267_s24 }
  0x9d   : > { %p3264_p13 = pnand %p3262_p10, %p3885_p7  ;;  %p3270_p2 = scmp.lt.s32.totalorder %s3268_s6, %s3261_s22 }
  0x9f   : > { %p3265_p3 = pneg %p3264_p13  ;;  %p3271_p4 = por %p3270_p2, %p3269_p1 }
  0xa1   : > { %p3272_p5 = pnand %p3271_p4, %p3265_p3 }
  0xa3   : > { %3275 = shalt.err (!%p3272_p5)
}
  0xa4   : > { %p4678_p9 = scmp.ne.s32.totalorder %s4668_s13, 0  ;;  %s4679_s17 = scalar_lea.sflag [#allocation16], %s3841_s4 }
  0xa5   : > { %s4680_s15 = sld [smem:[#allocation60_spill]]  ;;  %s732_s24 = scalar_lea.vmem [#allocation18], %s3866_s30 }
  0xa6   : > { %2940 = dma.hbm_to_vmem [thread:$0]  (!%p4678_p9), %s3941_s5, 16, %s698_s25, %s4679_s17  }
  0xa7   : > { %s739_s16 = sshll.u32 %s732_s24, 4  ;;  %s740_s16 = int_to_ptr.vmem [resolvable:$true] %s739_s16 }
  0xab   : > { %s3968_s3 = scalar_lea.hbm %s4680_s15, %s3869_s21  ;;  %s3281_s25 = scalar_lea.hbm %s4680_s15, 32 }
  0xac   : > { %s3276_s23 = scalar_lea.hbm %s3968_s3, 16  ;;  %p3282_p8 = scmp.lt.u32.totalorder %s3968_s3, %s4680_s15 }
  0xad   : > { %p3277_p4 = scmp.ne.s32.totalorder %s3968_s3, %s3276_s23  ;;  %p3283_p11 = scmp.lt.u32.totalorder %s3281_s25, %s3276_s23 }
  0xae   : > { %p3285_p10 = scmp.lt.u32.totalorder %s3276_s23, %s3968_s3 }
  0xaf   : > { %p3279_p6 = pnand %p3277_p4, %p3885_p7  ;;  %p3284_p12 = por %p3283_p11, %p3282_p8 }
  0xb1   : > { %p3280_p0 = pneg %p3279_p6  ;;  %p3286_p13 = por %p3285_p10, %p3284_p12 }
  0xb3   : > { %p3287_p3 = pnand %p3286_p13, %p3280_p0 }
  0xb5   : > { %3290 = shalt.err (!%p3287_p3)
}
  0xb6   : > { %s3291_s0 = scalar_lea.vmem %s740_s16, 16  ;;  %s3640_s24 = smov [#allocation18]  }
  0xb7   : > { %p3292_p1 = scmp.ne.s32.totalorder %s740_s16, %s3291_s0  ;;  %s3296_s22 = sshll.u32 %s3640_s24, 4  ;;  %s3297_s22 = int_to_ptr.vmem [resolvable:$false] %s3296_s22 }
  0xb8   : > { %s3298_s6 = scalar_lea.vmem %s3297_s22, 32  ;;  %p3299_p4 = scmp.lt.s32.totalorder %s740_s16, %s3297_s22 }
  0xb9   : > { %p3294_p2 = pnand %p3292_p1, %p3885_p7  ;;  %p3300_p6 = scmp.lt.s32.totalorder %s3298_s6, %s3291_s0 }
  0xbb   : > { %p3295_p5 = pneg %p3294_p2  ;;  %p3301_p9 = por %p3300_p6, %p3299_p4 }
  0xbd   : > { %p3302_p8 = pnand %p3301_p9, %p3295_p5 }
  0xbf   : > { %3305 = shalt.err (!%p3302_p8)
}
  0xc0   : > { %p4681_p11 = scmp.ne.s32.totalorder %s4668_s13, 0  ;;  %s4682_s23 = scalar_lea.sflag [#allocation19], %s3841_s4 }
  0xc1   : > { %s2627_s22 = sadd.s32 4294967294, %s3632_s1   ;;  %s57_s5 = sadd.s32 1, %s3624_s18 }
  0xc2   : > { %2946 = dma.hbm_to_vmem [thread:$0]  (!%p4681_p11), %s3968_s3, 16, %s740_s16, %s4682_s23  }
  0xc3   : > { %p58_p9 = scmp.ge.s32.totalorder %s57_s5, 2  ;;  %s60_s25 = sadd.s32 1, %s3628_s19 }
  0xc4   : > { %s93_s17 = sadd.s32 1, %s3612_s29  ;;  %p100_p0 = scmp.ne.s32.totalorder %s3612_s29, %s3608_s28 }
  0xc5   : > { %s4753_s5 = smov (%p58_p9, %s57_s5), 0  ;;  %s4755_s25 = smov (!%p58_p9, %s60_s25), %s3628_s19 }
  0xc6   : > { %4683 = sst [smem:[#allocation40_spill]] %s4753_s5  ;;  %p4684_p12 = scmp.eq.s32.totalorder %s3632_s1, 0 }
  0xc7   : > { %p106_p13 = scmp.ne.s32.totalorder %s3608_s28, %s3604_s27  ;;  %p62_p3 = scmp.ge.s32.totalorder %s4755_s25, 2 }
  0xc8   : > { %p4005_p10 = por %p4684_p12, %p100_p0  ;;  %s210_s16 = ssub.s32 %s3624_s18, %s4753_s5 }
  0xc9   : > { %p4686_p1 = scmp.eq.s32.totalorder %s3810_s20, 0  ;;  %p211_p5 = scmp.eq.s32.totalorder %s210_s16, 0 }
  0xca   : > { %s4757_s25 = smov (%p62_p3, %s4755_s25), 0  ;;  %s213_s0 = sadd.s32 1, %s3600_s26 }
  0xcb   : > { %p4018_p2 = por %p4686_p1, %p106_p13  ;;  %4688 = sst [smem:[#allocation41_spill]] %s4757_s25 }
  0xcc   : > { %p510_p4 = scmp.eq.s32.totalorder %s3810_s20, 3  ;;  %s90_s24 = ssub.s32 %s3628_s19, %s4757_s25 }
  0xcd   : > { %s4687_s11 = scalar_select %p4018_p2, 1, 0 }
  0xce   : > { %p516_p6 = scmp.eq.s32.totalorder %s2627_s22, 3  ;;  %p91_p8 = scmp.eq.s32.totalorder %s90_s24, 0 }
  0xcf   : > { %p4031_p9 = por %p510_p4, %p100_p0  ;;  %s559_s12 = sand.u32 1, %s3612_s29  }
  0xd0   : > { %s4036_s23 = scalar_select %p211_p5, %s3600_s26, %s213_s0  }
  0xd1   : > { %s4689_s6 = scalar_select %p4031_p9, 1, 0 }
  0xd2   : > { %4690 = sst [smem:[#allocation42_spill]] %s4036_s23  ;;  %p4044_p12 = por %p516_p6, %p106_p13 }
  0xd3   : > { %s4039_s9 = scalar_select %p91_p8, %s3612_s29, %s93_s17  }
  0xd4   : > { %s4692_s16 = scalar_select %p4044_p12, 1, 0 }
  0xd5   : > { %4691 = sst [smem:[#allocation43_spill]] %s4039_s9  ;;  %s4049_s15 = sshll.u32 %s559_s12, 3 }
  0xd6   : > { %4693 = sst [smem:[#allocation44_spill]] %s4692_s16  ;;  %s2632_s22 = sshll.u32 %s3628_s19, 7 }
  0xd7   : > { %s4694_s5 = sld [smem:[#allocation46_spill]]  ;;  %s563_s17 = scalar_lea.vmem [#allocation3], %s4049_s15 }
  0xd8   : > { %s570_s0 = sshll.u32 %s563_s17, 4  ;;  %p4695_p0 = scmp.lt.s32.totalorder %s3632_s1, 4  ;;  %s4058_s0 = int_to_ptr.vmem [resolvable:$true] %s570_s0 }
  0xd9   : > { %s4697_s2 = sld [smem:[#allocation47_spill]]  ;;  %s560_s24 = scalar_lea.sflag [#allocation4], %s559_s12 }
  0xda   : > { %p4064_p13 = pnand %p4695_p0, %p4005_p10 }
  0xdc   : > { %p3308_p1 = pneg %p4064_p13 }
  0xdd   : > { %s4055_s18 = scalar_lea.hbm %s4694_s5, %s2632_s22  ;;  %s3311_s26 = scalar_lea.hbm %s4694_s5, 256 }
  0xde   : > { %s3306_s23 = scalar_lea.hbm %s4055_s18, 128  ;;  %p3312_p10 = scmp.lt.u32.totalorder %s4055_s18, %s4694_s5 }
  0xdf   : > { %s4071_s25 = scalar_lea.hbm %s4697_s2, %s2632_s22  ;;  %p3307_p3 = scmp.ne.s32.totalorder %s4055_s18, %s3306_s23 }
  0xe0   : > { %p3313_p6 = scmp.lt.u32.totalorder %s3311_s26, %s3306_s23  ;;  %p3315_p0 = scmp.lt.u32.totalorder %s3306_s23, %s4055_s18 }
  0xe1   : > { %p3309_p5 = pnand %p3308_p1, %p3307_p3 }
  0xe2   : > { %p3314_p8 = por %p3313_p6, %p3312_p10 }
  0xe3   : > { %p3310_p4 = pneg %p3309_p5 }
  0xe4   : > { %p3316_p12 = por %p3315_p0, %p3314_p8 }
  0xe6   : > { %p3317_p9 = pnand %p3316_p12, %p3310_p4 }
  0xe8   : > { %3320 = shalt.err (!%p3317_p9)
}
  0xe9   : > { %s3321_s12 = scalar_lea.vmem %s4058_s0, 128  ;;  %s3641_s29 = smov [#allocation3]  }
  0xea   : > { %p3322_p3 = scmp.ne.s32.totalorder %s4058_s0, %s3321_s12  ;;  %s3326_s19 = sshll.u32 %s3641_s29, 4  ;;  %s3327_s19 = int_to_ptr.vmem [resolvable:$false] %s3326_s19 }
  0xeb   : > { %s3328_s27 = scalar_lea.vmem %s3327_s19, 256  ;;  %p3329_p11 = scmp.lt.s32.totalorder %s4058_s0, %s3327_s19 }
  0xec   : > { %p3324_p5 = pnand %p3322_p3, %p3308_p1  ;;  %p3330_p10 = scmp.lt.s32.totalorder %s3328_s27, %s3321_s12 }
  0xee   : > { %p3325_p2 = pneg %p3324_p5  ;;  %p3331_p6 = por %p3330_p10, %p3329_p11 }
  0xf0   : > { %p3332_p8 = pnand %p3331_p6, %p3325_p2 }
  0xf2   : > { %3335 = shalt.err (!%p3332_p8)
}
  0xf3   : > { %2922 = dma.hbm_to_vmem [thread:$0]  (!%p4064_p13), %s4055_s18, 128, %s4058_s0, %s560_s24  }
  0xf4   : > { %s581_s26 = scalar_lea.vmem [#allocation6], %s4049_s15  ;;  %s4698_s8 = sld [smem:[#allocation53_spill]] }
  0xf5   : > { %s588_s23 = sshll.u32 %s581_s26, 4  ;;  %s578_s17 = scalar_lea.sflag [#allocation7], %s3841_s4  ;;  %s4099_s23 = int_to_ptr.vmem [resolvable:$true] %s588_s23 }
  0xf6   : > { %s3336_s12 = scalar_lea.hbm %s4071_s25, 128  ;;  %s3341_s18 = scalar_lea.hbm %s4697_s2, 256 }
  0xf7   : > { %p3337_p11 = scmp.ne.s32.totalorder %s4071_s25, %s3336_s12  ;;  %p3342_p12 = scmp.lt.u32.totalorder %s4071_s25, %s4697_s2 }
  0xf8   : > { %p3343_p4 = scmp.lt.u32.totalorder %s3341_s18, %s3336_s12  ;;  %p3345_p3 = scmp.lt.u32.totalorder %s3336_s12, %s4071_s25 }
  0xf9   : > { %p3339_p2 = pnand %p3337_p11, %p3308_p1 }
  0xfa   : > { %s4105_s3 = scalar_lea.hbm %s4698_s8, %s3869_s21  ;;  %p3344_p0 = por %p3343_p4, %p3342_p12 }
  0xfb   : > { %p3340_p9 = pneg %p3339_p2 }
  0xfc   : > { %p3346_p5 = por %p3345_p3, %p3344_p0 }
  0xfe   : > { %p3347_p10 = pnand %p3346_p5, %p3340_p9 }
 0x100   : > { %3350 = shalt.err (!%p3347_p10)
}
 0x101   : > { %s3351_s24 = scalar_lea.vmem %s4099_s23, 128  ;;  %s3642_s27 = smov [#allocation6]  }
 0x102   : > { %p3352_p6 = scmp.ne.s32.totalorder %s4099_s23, %s3351_s24  ;;  %s3356_s26 = sshll.u32 %s3642_s27, 4  ;;  %s3357_s26 = int_to_ptr.vmem [resolvable:$false] %s3356_s26 }
 0x103   : > { %s3358_s16 = scalar_lea.vmem %s3357_s26, 256  ;;  %p3359_p2 = scmp.lt.s32.totalorder %s4099_s23, %s3357_s26 }
 0x104   : > { %p3354_p8 = pnand %p3352_p6, %p3308_p1  ;;  %p3360_p12 = scmp.lt.s32.totalorder %s3358_s16, %s3351_s24 }
 0x106   : > { %p3355_p11 = pneg %p3354_p8  ;;  %p3361_p4 = por %p3360_p12, %p3359_p2 }
 0x108   : > { %p3362_p0 = pnand %p3361_p4, %p3355_p11 }
 0x10a   : > { %3365 = shalt.err (!%p3362_p0)
}
 0x10b   : > { %2925 = dma.hbm_to_vmem [thread:$0]  (!%p4064_p13), %s4071_s25, 128, %s4099_s23, %s578_s17  }
 0x10c   : > { %s631_s22 = scalar_lea.vmem [#allocation11], %s3866_s30  ;;  %s4699_s10 = sld [smem:[#allocation55_spill]] }
 0x10d   : > { %s638_s12 = sshll.u32 %s631_s22, 4  ;;  %s3366_s15 = scalar_lea.hbm %s4105_s3, 16  ;;  %s639_s12 = int_to_ptr.vmem [resolvable:$true] %s638_s12 }
 0x10e   : > { %p3367_p1 = scmp.ne.s32.totalorder %s4105_s3, %s3366_s15  ;;  %s3371_s24 = scalar_lea.hbm %s4698_s8, 32 }
 0x10f   : > { %p3372_p13 = scmp.lt.u32.totalorder %s4105_s3, %s4698_s8  ;;  %p3373_p5 = scmp.lt.u32.totalorder %s3371_s24, %s3366_s15 }
 0x110   : > { %p3369_p9 = pnand %p3367_p1, %p3885_p7  ;;  %p3375_p6 = scmp.lt.u32.totalorder %s3366_s15, %s4105_s3 }
 0x111   : > { %p3374_p10 = por %p3373_p5, %p3372_p13 }
 0x112   : > { %s4136_s18 = scalar_lea.hbm %s4699_s10, %s3869_s21  ;;  %p3370_p3 = pneg %p3369_p9 }
 0x113   : > { %p3376_p8 = por %p3375_p6, %p3374_p10 }
 0x115   : > { %p3377_p11 = pnand %p3376_p8, %p3370_p3 }
 0x117   : > { %3380 = shalt.err (!%p3377_p11)
}
 0x118   : > { %s3381_s25 = scalar_lea.vmem %s639_s12, 16  ;;  %s3643_s23 = smov [#allocation11]  }
 0x119   : > { %p3382_p2 = scmp.ne.s32.totalorder %s639_s12, %s3381_s25  ;;  %s3386_s17 = sshll.u32 %s3643_s23, 4  ;;  %s3387_s17 = int_to_ptr.vmem [resolvable:$false] %s3386_s17 }
 0x11a   : > { %s3388_s16 = scalar_lea.vmem %s3387_s17, 32  ;;  %p3389_p0 = scmp.lt.s32.totalorder %s639_s12, %s3387_s17 }
 0x11b   : > { %p3384_p12 = pnand %p3382_p2, %p3885_p7  ;;  %p3390_p1 = scmp.lt.s32.totalorder %s3388_s16, %s3381_s25 }
 0x11d   : > { %p3385_p4 = pneg %p3384_p12  ;;  %p3391_p9 = por %p3390_p1, %p3389_p0 }
 0x11f   : > { %p3392_p5 = pnand %p3391_p9, %p3385_p4 }
 0x121   : > { %3395 = shalt.err (!%p3392_p5)
}
 0x122   : > { %p4700_p13 = scmp.ne.s32.totalorder %s4668_s13, 0  ;;  %s4701_s22 = scalar_lea.sflag [#allocation10], %s3841_s4 }
 0x123   : > { %s665_s29 = scalar_lea.vmem [#allocation14], %s3866_s30  ;;  %s4702_s14 = sld [smem:[#allocation59_spill]] }
 0x124   : > { %2931 = dma.hbm_to_vmem [thread:$0]  (!%p4700_p13), %s4105_s3, 16, %s639_s12, %s4701_s22  }
 0x125   : > { %s672_s19 = sshll.u32 %s665_s29, 4  ;;  %s3396_s24 = scalar_lea.hbm %s4136_s18, 16  ;;  %s673_s19 = int_to_ptr.vmem [resolvable:$true] %s672_s19 }
 0x126   : > { %p3397_p3 = scmp.ne.s32.totalorder %s4136_s18, %s3396_s24  ;;  %s3401_s25 = scalar_lea.hbm %s4699_s10, 32 }
 0x127   : > { %p3402_p8 = scmp.lt.u32.totalorder %s4136_s18, %s4699_s10  ;;  %p3403_p11 = scmp.lt.u32.totalorder %s3401_s25, %s3396_s24 }
 0x128   : > { %p3399_p10 = pnand %p3397_p3, %p3885_p7  ;;  %p3405_p12 = scmp.lt.u32.totalorder %s3396_s24, %s4136_s18 }
 0x129   : > { %s4162_s0 = scalar_lea.hbm %s4702_s14, %s3869_s21  ;;  %p3404_p2 = por %p3403_p11, %p3402_p8 }
 0x12a   : > { %p3400_p6 = pneg %p3399_p10 }
 0x12b   : > { %p3406_p4 = por %p3405_p12, %p3404_p2 }
 0x12d   : > { %p3407_p0 = pnand %p3406_p4, %p3400_p6 }
 0x12f   : > { %3410 = shalt.err (!%p3407_p0)
}
 0x130   : > { %s3411_s3 = scalar_lea.vmem %s673_s19, 16  ;;  %s3644_s12 = smov [#allocation14]  }
 0x131   : > { %p3412_p1 = scmp.ne.s32.totalorder %s673_s19, %s3411_s3  ;;  %s3416_s16 = sshll.u32 %s3644_s12, 4  ;;  %s3417_s16 = int_to_ptr.vmem [resolvable:$false] %s3416_s16 }
 0x132   : > { %s3418_s22 = scalar_lea.vmem %s3417_s16, 32  ;;  %p3419_p3 = scmp.lt.s32.totalorder %s673_s19, %s3417_s16 }
 0x133   : > { %p3414_p9 = pnand %p3412_p1, %p3885_p7  ;;  %p3420_p10 = scmp.lt.s32.totalorder %s3418_s22, %s3411_s3 }
 0x135   : > { %p3415_p5 = pneg %p3414_p9  ;;  %p3421_p13 = por %p3420_p10, %p3419_p3 }
 0x137   : > { %p3422_p8 = pnand %p3421_p13, %p3415_p5 }
 0x139   : > { %3425 = shalt.err (!%p3422_p8)
}
 0x13a   : > { %p4703_p11 = scmp.ne.s32.totalorder %s4668_s13, 0  ;;  %s4704_s29 = scalar_lea.sflag [#allocation13], %s3841_s4 }
 0x13b   : > { %s715_s15 = scalar_lea.vmem [#allocation17], %s3866_s30  ;;  %s4705_s26 = sld [smem:[#allocation61_spill]] }
 0x13c   : > { %2937 = dma.hbm_to_vmem [thread:$0]  (!%p4703_p11), %s4136_s18, 16, %s673_s19, %s4704_s29  }
 0x13d   : > { %s722_s9 = sshll.u32 %s715_s15, 4  ;;  %s3426_s17 = scalar_lea.hbm %s4162_s0, 16  ;;  %s723_s9 = int_to_ptr.vmem [resolvable:$true] %s722_s9 }
 0x13e   : > { %p3427_p13 = scmp.ne.s32.totalorder %s4162_s0, %s3426_s17  ;;  %s3431_s16 = scalar_lea.hbm %s4702_s14, 32 }
 0x13f   : > { %p3432_p12 = scmp.lt.u32.totalorder %s4162_s0, %s4702_s14  ;;  %p3433_p4 = scmp.lt.u32.totalorder %s3431_s16, %s3426_s17 }
 0x140   : > { %p3429_p6 = pnand %p3427_p13, %p3885_p7  ;;  %p3435_p1 = scmp.lt.u32.totalorder %s3426_s17, %s4162_s0 }
 0x141   : > { %s4706_s23 = smov %s4705_s26  ;;  %s4188_s25 = scalar_lea.hbm %s4705_s26, %s3869_s21 }
 0x142   : > { %p3430_p2 = pneg %p3429_p6  ;;  %p3434_p0 = por %p3433_p4, %p3432_p12 }
 0x144   : > { %p3436_p9 = por %p3435_p1, %p3434_p0 }
 0x146   : > { %p3437_p5 = pnand %p3436_p9, %p3430_p2 }
 0x148   : > { %3440 = shalt.err (!%p3437_p5)
}
 0x149   : > { %s3441_s21 = scalar_lea.vmem %s723_s9, 16  ;;  %s3645_s18 = smov [#allocation17]  }
 0x14a   : > { %p3442_p3 = scmp.ne.s32.totalorder %s723_s9, %s3441_s21  ;;  %s3446_s19 = sshll.u32 %s3645_s18, 4  ;;  %s3447_s19 = int_to_ptr.vmem [resolvable:$false] %s3446_s19 }
 0x14b   : > { %s3448_s29 = scalar_lea.vmem %s3447_s19, 32  ;;  %p3449_p13 = scmp.lt.s32.totalorder %s723_s9, %s3447_s19 }
 0x14c   : > { %p3444_p10 = pnand %p3442_p3, %p3885_p7  ;;  %p3450_p6 = scmp.lt.s32.totalorder %s3448_s29, %s3441_s21 }
 0x14e   : > { %p3445_p8 = pneg %p3444_p10  ;;  %p3451_p11 = por %p3450_p6, %p3449_p13 }
 0x150   : > { %p3452_p4 = pnand %p3451_p11, %p3445_p8 }
 0x152   : > { %3455 = shalt.err (!%p3452_p4)
}
 0x153   : > { %p4707_p12 = scmp.ne.s32.totalorder %s4668_s13, 0  ;;  %s4708_s2 = scalar_lea.sflag [#allocation16], %s3841_s4 }
 0x154   : > { %s749_s15 = scalar_lea.vmem [#allocation20], %s3866_s30  ;;  %s3456_s27 = scalar_lea.hbm %s4188_s25, 16 }
 0x155   : > { %2943 = dma.hbm_to_vmem [thread:$0]  (!%p4707_p12), %s4162_s0, 16, %s723_s9, %s4708_s2  }
 0x156   : > { %s756_s24 = sshll.u32 %s749_s15, 4  ;;  %p3457_p2 = scmp.ne.s32.totalorder %s4188_s25, %s3456_s27  ;;  %s757_s24 = int_to_ptr.vmem [resolvable:$true] %s756_s24 }
 0x157   : > { %s3461_s3 = scalar_lea.hbm %s4706_s23, 32  ;;  %p3462_p1 = scmp.lt.u32.totalorder %s4188_s25, %s4706_s23 }
 0x158   : > { %p3459_p11 = pnand %p3457_p2, %p3885_p7  ;;  %p3463_p9 = scmp.lt.u32.totalorder %s3461_s3, %s3456_s27 }
 0x159   : > { %p3465_p3 = scmp.lt.u32.totalorder %s3456_s27, %s4188_s25 }
 0x15a   : > { %p3460_p0 = pneg %p3459_p11  ;;  %p3464_p5 = por %p3463_p9, %p3462_p1 }
 0x15c   : > { %p3466_p10 = por %p3465_p3, %p3464_p5 }
 0x15e   : > { %p3467_p8 = pnand %p3466_p10, %p3460_p0 }
 0x160   : > { %3470 = shalt.err (!%p3467_p8)
}
 0x161   : > { %s3471_s30 = scalar_lea.vmem %s757_s24, 16  ;;  %s3646_s0 = smov [#allocation20]  }
 0x162   : > { %p3472_p13 = scmp.ne.s32.totalorder %s757_s24, %s3471_s30  ;;  %s3476_s9 = sshll.u32 %s3646_s0, 4  ;;  %s3477_s9 = int_to_ptr.vmem [resolvable:$false] %s3476_s9 }
 0x163   : > { %s3478_s22 = scalar_lea.vmem %s3477_s9, 32  ;;  %p3479_p2 = scmp.lt.s32.totalorder %s757_s24, %s3477_s9 }
 0x164   : > { %p3474_p6 = pnand %p3472_p13, %p3885_p7  ;;  %p3480_p11 = scmp.lt.s32.totalorder %s3478_s22, %s3471_s30 }
 0x166   : > { %p3475_p4 = pneg %p3474_p6  ;;  %p3481_p12 = por %p3480_p11, %p3479_p2 }
 0x168   : > { %p3482_p1 = pnand %p3481_p12, %p3475_p4 }
 0x16a   : > { %3485 = shalt.err (!%p3482_p1)
}
 0x16b   : > { %p4709_p9 = scmp.ne.s32.totalorder %s4668_s13, 0  ;;  %s4710_s21 = scalar_lea.sflag [#allocation19], %s3841_s4 }
 0x16c   : > { %s4711_s18 = sld [smem:[#allocation39_spill]] }
 0x16d   : > { %2949 = dma.hbm_to_vmem [thread:$0]  (!%p4709_p9), %s4188_s25, 16, %s757_s24, %s4710_s21  }
 0x172   : > { %p4712_p0 = scmp.ne.s32.totalorder %s4711_s18, 0 }
 0x173   : > { %s4232_s7 = sand.u32 (!%p4712_p0), 1, %s3608_s28   ;;  %p4713_p7 = scmp.ne.s32.totalorder (!%p4712_p0), %s4687_s11, 0 }
 0x174   : > { %765 = sbr.rel (%p4712_p0) target bundleno = 4872 (0x1308), region = 88  ;;  %s2644_s19 = sshll.u32 (!%p4712_p0), %s4232_s7, 3 }
 0x175   : > { %s768_s29 = scalar_lea.sflag (!%p4712_p0), [#allocation4], %s4232_s7  ;;  %s4236_s2 = scalar_lea.vmem (!%p4712_p0), [#allocation3], %s2644_s19 }
 0x17b   : > { %3559 = dma.done.wait (%p4713_p7), %s768_s29, 128  }
 0x17c   : > { %3561 = vsyncadd (%p4713_p7), %s768_s29, 4294967168  ;;  %s776_s4 = sand.u32 1, %s3810_s20   ;;  %s4243_s25 = scalar_lea.vmem [#allocation6], %s2644_s19 }
 0x17d   : > { %s777_s13 = scalar_lea.sflag [#allocation7], %s776_s4 }
 0x17e   : > { %3563 = dma.done.wait (%p4713_p7), %s777_s13, 128  }
 0x17f   : > { %3565 = vsyncadd (%p4713_p7), %s777_s13, 4294967168  ;;  %p4714_p12 = scmp.eq.s32.totalorder %s3810_s20, 0 }
 0x181   : > { %3567 = dma.done.wait (%p4714_p12), [#allocation7], 384   ;;  %p4715_p5 = pmov %p4714_p12 }
 0x182   : > { %s4716_s15 = sld [smem:[#allocation30_spill]]  ;;  %s4717_s24 = sld [smem:[#allocation38_spill]] }
 0x183   : > { %3569 = vsyncadd (%p4715_p5), [#allocation7], 4294966912  ;;  %s790_s26 = scalar_lea.sflag [#allocation10], %s776_s4 }
 0x188   : > { %s4254_s27 = sand.u32 1, %s4716_s15   ;;  %p4718_p3 = scmp.ne.s32.totalorder %s4717_s24, 0 }
 0x18a   : > { %3571 = dma.done.wait (%p4718_p3), %s790_s26, 32  }
 0x18b   : > { %3573 = vsyncadd (%p4718_p3), %s790_s26, 4294967264  ;;  %s806_s3 = scalar_lea.sflag [#allocation13], %s776_s4 }
 0x18c   : > { %3575 = dma.done.wait (%p4718_p3), %s806_s3, 32  }
 0x18d   : > { %3577 = vsyncadd (%p4718_p3), %s806_s3, 4294967264  ;;  %s822_s16 = scalar_lea.sflag [#allocation16], %s776_s4 }
 0x18e   : > { %3579 = dma.done.wait (%p4718_p3), %s822_s16, 32  }
 0x18f   : > { %3581 = vsyncadd (%p4718_p3), %s822_s16, 4294967264  ;;  %s838_s9 = scalar_lea.sflag [#allocation19], %s776_s4 }
 0x190   : > { %3583 = dma.done.wait (%p4718_p3), %s838_s9, 32  }
 0x191   : > { %3585 = vsyncadd (%p4718_p3), %s838_s9, 4294967264  ;;  %s4719_s21 = sld [smem:[#allocation35_spill]]  ;;  %s4720_s18 = sld [smem:[#allocation34_spill]] }
 0x192   : > { %s2887_s19 = smul.u32 24, %s4232_s7  ;;  %s4721_s26 = sld [smem:[#allocation45_spill]] }
 0x193   : > { %s4722_s9 = sld [smem:[#allocation50_spill]]  ;;  %s4723_s12 = sld [smem:[#allocation52_spill]] }
 0x194   : > { %s4724_s8 = sld [smem:[#allocation56_spill]]  ;;  %s4308_s22 = scalar_lea.vmem [#allocation21], %s2887_s19 }
 0x197   : > { %p960_p10 = scmp.lt.s32.totalorder %s4719_s21, 1  ;;  %p964_p8 = scmp.lt.s32.totalorder %s4720_s18, 1 }
 0x198   : > { %p2656_p13 = scmp.ne.s32.totalorder %s4720_s18, 0 }
 0x199   : > { %s4759_s21 = smov (!%p960_p10, %s4719_s21), 1  ;;  %v995_v0 = vld [vmem:[#allocation8] sm:$0xff] (!%p2656_p13)  ;;  %v996_v1 = vld [vmem:[#allocation8 + $0x8] sm:$0xff] (!%p2656_p13)  ;;  %v3647_v2 = vmov (!%p2656_p13), 0.0|0.0   ;;  %vm3648_vm0 = vmmov (!%p2656_p13), 0   ;;  %v3649_v4 = vmov (!%p2656_p13), 0.0  }
 0x19a   : > { %s965_s29 = scalar_select %p964_p8, %s4720_s18, 1 }
 0x19b   : > { %s2647_s13 = sshll.u32 %s4759_s21, 3  ;;  %2872 = vmatprep.subr.bf16.mxu0 (!%p2656_p13), %v3647_v2  ;;  %v2873_v3 = vpack.c.bf16 (!%p2656_p13), %v996_v1, %v995_v0  ;;  %2769 = vmatprep.mubr.msk.f32.mxu0 (!%p2656_p13), %vm3648_vm0, %v3649_v4  ;;  %vm990_vm1 = vcmask (!%p2656_p13), 261120   ;;  %v992_v6 = vld [vmem:[%s4236_s2] sm:$0xff] (!%p2656_p13)  ;;  %v997_v7 = vld [vmem:[#allocation8 + $0x10] sm:$0xff] (!%p2656_p13)  ;;  %vm1005_vm2 = vcmask (!%p2656_p13), 195584   ;;  %s4726_s5 = sld [smem:[#allocation49_spill]] (!%p2656_p13) }
 0x19c   : > { %s963_s3 = scalar_lea.vmem %s4721_s26, %s2647_s13  ;;  %s2705_s16 = sshll.u32 %s965_s29, 4  ;;  %993 = vst.msk [vmem:[#allocation2 + $0x8] sm:$0xff] (!%p2656_p13), %vm990_vm1, %v992_v6  ;;  %v994_v8 = vld [vmem:[%s4243_s25] sm:$0xff] (!%p2656_p13) }
 0x19d   : > { %s4290_s0 = scalar_lea.vmem %s4722_s9, %s2705_s16  ;;  %s4295_s11 = scalar_lea.vmem %s4723_s12, %s2705_s16  ;;  %v989_v5 = vld [vmem:[%s963_s3] sm:$0xff] (!%p2656_p13)  ;;  %2874 = vmatpush3.bf16.msra.mxu0 (!%p2656_p13), %v2873_v3 }
 0x19e   : > { %s4300_s10 = scalar_lea.vmem %s4724_s8, %s2705_s16  ;;  %s2708_s21 = sshll.u32 %s965_s29, 5  ;;  %991 = vst.msk [vmem:[#allocation2] sm:$0xff] (!%p2656_p13), %vm990_vm1, %v989_v5  ;;  %2767 = vmatprep.subr.mxu0 (!%p2656_p13), %v3649_v4 }
 0x19f   : > { %s4725_s13 = sld [smem:[#allocation58_spill]]  ;;  %s848_s26 = scalar_lea.vmem [#allocation20], %s4254_s27 }
 0x1a0   : > { %988 = sbr.rel (%p2656_p13) target bundleno = 633 (0x279), region = 136 }
 0x1a1   : > { %2768 = vmatpush3.msra.mxu0 (!%p2656_p13), %v997_v7  ;;  %v2657_v9 = vld [vmem:[%s4726_s5] ss:$0 sm:$0xff] (!%p2656_p13) }
 0x1a2   : > { %2770 = vmatmul.mubr.msk.f32.vlgmr.msra.gmra.mrb[0].mxu0 (!%p2656_p13), %vm1005_vm2, %v994_v8 }
 0x1a5   : > { %s4305_s4 = scalar_lea.vmem %s4725_s13, %s2708_s21 }
 0x275   : > { %v1075_v10 = vpop.f32.mrb[0].mxu0 }
 0x276   : > { %v1076_v11 = vadd.f32 %v2657_v9, %v1075_v10  ;;  %v2771_v12 = vpop.f32.mrb[1].mxu0 }
 0x278   : > { %1079 = vst.msk [vmem:[#allocation2 + $0x10] sm:$0xff] %vm990_vm1, %v1076_v11 }
 0x279 PF: > { %v3082_v13 = vld [vmem:[%s4290_s0] sm:$0xff]   ;;  %v3083_v14 = vld [vmem:[%s4290_s0 + $0x8] sm:$0xff]   ;;  %vm1108_vm3 = vcmask 261120   ;;  %s4727_s2 = scalar_lea.vmem [#allocation9], %s4254_s27  ;;  %vm1171_vm4 = vcmask 64512   ;;  %s3650_s25 = smov 96  }
 0x27a   : > { %2772 = vmatprep.subr.bf16.mxu0 %v3082_v13  ;;  %v4318_v15 = vld [vmem:[#allocation2] sm:$0xff]  ;;  %v4320_v16 = vld [vmem:[#allocation2 + $0x8] sm:$0xff]  ;;  %vm1232_vm5 = vcmask 195584   ;;  %s3651_s17 = smov 88   ;;  %s3652_s12 = smov 64   ;;  %vm1279_vm6 = vcmask 1043456  }
 0x27b   : > { %2773 = vmatpush3.bf16.msra.mxu0 %v3082_v13  ;;  %v1083_v18 = vpack.c.bf16 %v4320_v16, %v4318_v15  ;;  %v2659_v21 = vld [vmem:[%s4727_s2] ss:$0 sm:$0xff]  ;;  %s3653_s20 = smov 120   ;;  %s3654_s30 = smov 56   ;;  %vm1865_vm7 = vcmask 130048   ;;  %vm2161_vm8 = vcmask 523264  }
 0x27c   : > { %2774 = vmatprep.subr.bf16.mxu0 %v3083_v14  ;;  %s3655_s0 = smov 80   ;;  %s3656_s18 = smov 112  }
 0x27d   : > { %2776 = vmatprep.mubr.msk.bf16.mxu0 %vm1108_vm3, %v1083_v18  ;;  %s3657_s19 = smov 48   ;;  %s3658_s29 = smov 72  }
 0x27e   : > { %s3659_s3 = smov 104   ;;  %s3660_s16 = smov 40  }
 0x27f   : > { %v4322_v17 = vld [vmem:[#allocation2 + $0x10] sm:$0xff]  ;;  %2775 = vmatpush3.bf16.msra.mxu0 %v3083_v14  ;;  %s3661_s24 = smov 8   ;;  %s3662_s9 = smov 16  }
 0x280   : > { %v1084_v19 = vpack.c.bf16 %v4322_v17, %v4322_v17  ;;  %s3663_s21 = smov 24   ;;  %s4729_s15 = scalar_lea.vmem [#allocation12], %s4254_s27 }
 0x281   : > { %s4731_s13 = scalar_lea.vmem [#allocation15], %s4254_s27  ;;  %s4733_s8 = scalar_lea.vmem [#allocation18], %s4254_s27 }
 0x282   : > { %2777 = vmatmul.mubr.msk.bf16.vlgmr.msra.gmra.mrb[0].mxu0 %vm1108_vm3, %v1084_v19  ;;  %s4734_s14 = sld [smem:[#allocation34_spill]] }
 0x288   : > { %p2701_p6 = scmp.ne.s32.totalorder %s4734_s14, 1 }
 0x355   : > { %v2778_v20 = vpop.f32.mrb[0].mxu0 }
 0x356   : > { %v1149_v22 = vpop.f32.mrb[1].mxu0  ;;  %v1158_v27 = vadd.f32 %v2778_v20, %v2659_v21 }
 0x357   : > { %v2779_v23 = vpop.f32.mrb[2].mxu0  ;;  %v1150_v25 = vadd.f32 %v2659_v21, %v1149_v22 }
 0x358   : > { %v1152_v24 = vpop.f32.mrb[3].mxu0  ;;  %v4337_v29 = vpack.c.bf16 %v1158_v27, %v1158_v27 }
 0x359   : > { %v1153_v26 = vadd.f32 %v2659_v21, %v1152_v24 }
 0x35b   : > { %v4332_v28 = vpack.c.bf16 %v1153_v26, %v1150_v25 }
 0x35d   : > { %1167 = vrot.lane.b32.xlu0 %v4332_v28, %s3650_s25  ;;  %2784 = vmatprep.mubr.msk.bf16.mxu1 %vm1171_vm4, %v4332_v28 }
 0x361   : > { %1169 = vrot.lane.b32.xlu0 %v4337_v29, %s3650_s25 }
 0x3cf   : > { %v1168_v30 = vpop.permute.xlu0 %1167 }
 0x3d0   : > { %2875 = vmatprep.subr.msk.bf16.mxu1 %vm1171_vm4, %v1168_v30  ;;  %v1179_v31 = vsel %vm1171_vm4, %v1168_v30, 0 }
 0x3d1   : > { %2781 = vmatpush3.bf16.xpose.msra.mxu1 %v1179_v31 }
 0x3d3   : > { %v1170_v32 = vpop.permute.xlu0 %1169 }
 0x3d4   : > { %2876 = vmatprep.subr.msk.bf16.mxu1 %vm1171_vm4, %v1170_v32  ;;  %v1182_v33 = vsel %vm1171_vm4, %v1170_v32, 0 }
 0x3d9   : > { %2783 = vmatpush3.bf16.xpose.msra.mxu1 %v1182_v33 }
 0x3e0   : > { %2785 = vmatmul.mubr.msk.bf16.vlgmr.msra.gmra.mrb[0].mxu1 %vm1171_vm4, %v4337_v29 }
 0x4b3   : > { %v2786_v34 = vpop.f32.mrb[0].mxu1 }
 0x4b4   : > { %v1218_v35 = vpop.f32.mrb[1].mxu1  ;;  %v1239_v36 = vsel %vm1232_vm5, %v2786_v34, -inf }
 0x4b5   : > { %1240 = vmax.xlane.f32.xlu0 %v1239_v36  ;;  %v2787_v37 = vpop.f32.mrb[2].mxu1  ;;  %v1233_v38 = vsel %vm1232_vm5, %v1218_v35, -inf }
 0x4b6   : > { %1234 = vmax.xlane.f32.xlu1 %v1233_v38  ;;  %v1221_v39 = vpop.f32.mrb[3].mxu1 }
 0x4b7   : > { %v1236_v40 = vsel %vm1232_vm5, %v1221_v39, -inf }
 0x4ba   : > { %1237 = vmax.xlane.f32.xlu1 %v1236_v40 }
 0x4cb   : > { %1335 = vrot.lane.b32.xlu0 %v4332_v28, %s3651_s17  ;;  %1268 = vrot.lane.b32.xlu1 %v4332_v28, %s3652_s12 }
 0x542   : > { %v1241_v41 = vpop.xlane.xlu0 %1240 }
 0x543   : > { %v1244_v42 = vsub.f32 %v2786_v34, %v1241_v41  ;;  %v1235_v43 = vpop.xlane.xlu1 %1234 }
 0x544   : > { %v1242_v44 = vsub.f32 %v1218_v35, %v1235_v43 }
 0x545   : > { %v1249_v45 = vmul.f32 1.442695, %v1244_v42 }
 0x546   : > { %v1245_v46 = vmul.f32 1.442695, %v1242_v44  ;;  %v1336_v62 = vpop.permute.xlu0 %1335 }
 0x547   : > { %3092 = vpow2.f32 %v1249_v45  ;;  %v1238_v47 = vpop.xlane.xlu1 %1237  ;;  %v1346_v8 = vsel %vm1171_vm4, %v1336_v62, 0 }
 0x548   : > { %v1243_v48 = vsub.f32 %v1221_v39, %v1238_v47  ;;  %3094 = vpow2.f32 %v1245_v46 }
 0x54a   : > { %v1247_v49 = vmul.f32 1.442695, %v1243_v48 }
 0x54b   : > { %v1269_v50 = vpop.permute.xlu1 %1268 }
 0x54c   : > { %2788 = vmatprep.subr.bf16.mxu0 %v1269_v50  ;;  %3096 = vpow2.f32 %v1247_v49 }
 0x54d   : > { %2789 = vmatpush3.bf16.msra.mxu0 %v1269_v50 }
 0x551   : > { %v3093_v51 = vpop.eup %3092 }
 0x552   : > { %v1257_v52 = vsel %vm1232_vm5, %v3093_v51, 0.0  ;;  %v3095_v53 = vpop.eup %3094 }
 0x553   : > { %1258 = vadd.xlane.f32.xlu1 %v1257_v52  ;;  %v1251_v54 = vsel %vm1232_vm5, %v3095_v53, 0.0 }
 0x556   : > { %v3097_v55 = vpop.eup %3096 }
 0x557   : > { %1252 = vadd.xlane.f32.xlu1 %v1251_v54  ;;  %v1254_v56 = vsel %vm1232_vm5, %v3097_v55, 0.0 }
 0x55b   : > { %1255 = vadd.xlane.f32.xlu1 %v1254_v56 }
 0x56c   : > { %1270 = vrot.lane.b32.xlu1 %v4337_v29, %s3652_s12 }
 0x570   : > { %1337 = vrot.lane.b32.xlu1 %v4337_v29, %s3651_s17 }
 0x574   : > { %1331 = vrot.lane.b32.xlu1 %v4332_v28, %s3653_s20 }
 0x578   : > { %1333 = vrot.lane.b32.xlu1 %v4337_v29, %s3653_s20 }
 0x5e0   : > { %v1259_v57 = vpop.xlane.xlu1 %1258 }
 0x5e1   : > { %3098 = vrcp.f32 %v1259_v57 }
 0x5e4   : > { %v1253_v58 = vpop.xlane.xlu1 %1252 }
 0x5e5   : > { %3100 = vrcp.f32 %v1253_v58 }
 0x5e8   : > { %v1256_v59 = vpop.xlane.xlu1 %1255 }
 0x5e9   : > { %3102 = vrcp.f32 %v1256_v59 }
 0x5eb   : > { %v3099_v63 = vpop.eup %3098 }
 0x5ec   : > { %v1271_v60 = vpop.permute.xlu1 %1270  ;;  %v1265_v2 = vmul.f32 %v3099_v63, %v3093_v51 }
 0x5ed   : > { %v1281_v61 = vsel %vm1279_vm6, %v1271_v60, 0  ;;  %2877 = vmatprep.subr.msk.bf16.mxu0 %vm1279_vm6, %v1271_v60 }
 0x5ee   : > { %2791 = vmatpush3.bf16.msra.mxu0 %v1281_v61  ;;  %v1267_v7 = vpack.c.bf16 %v1265_v2, %v1265_v2 }
 0x5ef   : > { %2878 = vmatprep.subr.msk.bf16.mxu0 %vm1171_vm4, %v1336_v62  ;;  %v3101_v0 = vpop.eup %3100 }
 0x5f0   : > { %v1338_v3 = vpop.permute.xlu1 %1337  ;;  %v1263_v4 = vmul.f32 %v3101_v0, %v3095_v53 }
 0x5f1   : > { %v1349_v10 = vsel %vm1171_vm4, %v1338_v3, 0 }
 0x5f3   : > { %v3103_v1 = vpop.eup %3102 }
 0x5f4   : > { %v1264_v5 = vmul.f32 %v3103_v1, %v3097_v55  ;;  %v1332_v9 = vpop.permute.xlu1 %1331 }
 0x5f6   : > { %v1266_v6 = vpack.c.bf16 %v1264_v5, %v1263_v4 }
 0x5f8   : > { %2792 = vmatprep.mubr.msk.bf16.mxu0 %vm1232_vm5, %v1266_v6  ;;  %v1334_v11 = vpop.permute.xlu1 %1333 }
 0x5f9   : > { %2793 = vmatmul.mubr.msk.bf16.vlgmr.msra.gmra.mrb[4].mxu0 %vm1232_vm5, %v1267_v7 }
 0x5fa   : > { %2797 = vmatpush3.bf16.xpose.msra.mxu0 %v1346_v8  ;;  %2800 = vmatprep.mubr.msk.bf16.mxu0 %vm1171_vm4, %v1332_v9 }
 0x5fb   : > { %2879 = vmatprep.subr.msk.bf16.mxu0 %vm1171_vm4, %v1338_v3 }
 0x602   : > { %2799 = vmatpush3.bf16.xpose.msra.mxu0 %v1349_v10 }
 0x609   : > { %2801 = vmatmul.mubr.msk.bf16.vlgmr.msra.gmra.mrb[8].mxu0 %vm1171_vm4, %v1334_v11 }
 0x6cc   : > { %v4368_v12 = vpop.f32.mrb[4].mxu0 }
 0x6cd   : > { %v4370_v13 = vpop.f32.mrb[5].mxu0 }
 0x6ce   : > { %v2795_v14 = vpop.f32.mrb[6].mxu0 }
 0x6cf   : > { %v4372_v18 = vpop.f32.mrb[7].mxu0 }
 0x6dc   : > { %v2802_v19 = vpop.f32.mrb[8].mxu0 }
 0x6dd   : > { %v1385_v20 = vpop.f32.mrb[9].mxu0  ;;  %v1405_v25 = vsel %vm1232_vm5, %v2802_v19, -inf }
 0x6de   : > { %v2803_v21 = vpop.f32.mrb[10].mxu0  ;;  %v1399_v22 = vsel %vm1232_vm5, %v1385_v20, -inf }
 0x6df   : > { %1400 = vmax.xlane.f32.xlu1 %v1399_v22  ;;  %v1388_v23 = vpop.f32.mrb[11].mxu0 }
 0x6e0   : > { %v1402_v24 = vsel %vm1232_vm5, %v1388_v23, -inf }
 0x6e1   : > { %1403 = vmax.xlane.f32.xlu0 %v1402_v24 }
 0x6e3   : > { %1406 = vmax.xlane.f32.xlu1 %v1405_v25 }
 0x6f4   : > { %1434 = vrot.lane.b32.xlu1 %v4332_v28, %s3654_s30 }
 0x76c   : > { %v1401_v26 = vpop.xlane.xlu1 %1400 }
 0x76d   : > { %v1408_v30 = vsub.f32 %v1385_v20, %v1401_v26 }
 0x76e   : > { %v1404_v27 = vpop.xlane.xlu0 %1403 }
 0x76f   : > { %v1409_v31 = vsub.f32 %v1388_v23, %v1404_v27  ;;  %v1411_v35 = vmul.f32 1.442695, %v1408_v30 }
 0x770   : > { %v1407_v32 = vpop.xlane.xlu1 %1406 }
 0x771   : > { %v1413_v33 = vmul.f32 1.442695, %v1409_v31  ;;  %v1410_v34 = vsub.f32 %v2802_v19, %v1407_v32 }
 0x773   : > { %3104 = vpow2.f32 %v1413_v33  ;;  %v1415_v36 = vmul.f32 1.442695, %v1410_v34 }
 0x774   : > { %v1435_v37 = vpop.permute.xlu1 %1434 }
 0x775   : > { %3106 = vpow2.f32 %v1415_v36  ;;  %2804 = vmatprep.subr.bf16.mxu1 %v1435_v37 }
 0x776   : > { %2805 = vmatpush3.bf16.msra.mxu1 %v1435_v37  ;;  %3108 = vpow2.f32 %v1411_v35 }
 0x77d   : > { %v3105_v38 = vpop.eup %3104 }
 0x77e   : > { %v1420_v39 = vsel %vm1232_vm5, %v3105_v38, 0.0 }
 0x77f   : > { %v3107_v40 = vpop.eup %3106  ;;  %1421 = vadd.xlane.f32.xlu1 %v1420_v39 }
 0x780   : > { %v1423_v41 = vsel %vm1232_vm5, %v3107_v40, 0.0  ;;  %v3109_v42 = vpop.eup %3108 }
 0x781   : > { %1424 = vadd.xlane.f32.xlu0 %v1423_v41  ;;  %v1417_v43 = vsel %vm1232_vm5, %v3109_v42, 0.0 }
 0x785   : > { %1418 = vadd.xlane.f32.xlu0 %v1417_v43 }
 0x790   : > { %1500 = vrot.lane.b32.xlu1 %v4332_v28, %s3655_s0 }
 0x794   : > { %1502 = vrot.lane.b32.xlu1 %v4337_v29, %s3655_s0 }
 0x798   : > { %1498 = vrot.lane.b32.xlu1 %v4337_v29, %s3656_s18 }
 0x79b   : > { %1436 = vrot.lane.b32.xlu0 %v4337_v29, %s3654_s30 }
 0x79f   : > { %1496 = vrot.lane.b32.xlu0 %v4332_v28, %s3656_s18 }
 0x80c   : > { %v1422_v44 = vpop.xlane.xlu1 %1421 }
 0x80e   : > { %v1425_v45 = vpop.xlane.xlu0 %1424 }
 0x80f   : > { %3110 = vrcp.f32 %v1425_v45 }
 0x810   : > { %3112 = vrcp.f32 %v1422_v44  ;;  %v1501_v49 = vpop.permute.xlu1 %1500 }
 0x811   : > { %v1511_v58 = vsel %vm1171_vm4, %v1501_v49, 0 }
 0x812   : > { %v1419_v46 = vpop.xlane.xlu0 %1418 }
 0x813   : > { %3114 = vrcp.f32 %v1419_v46 }
 0x814   : > { %v1503_v60 = vpop.permute.xlu1 %1502 }
 0x815   : > { %v1514_v61 = vsel %vm1171_vm4, %v1503_v60, 0 }
 0x816   : > { %v1437_v47 = vpop.permute.xlu0 %1436 }
 0x817   : > { %v1446_v48 = vsel %vm1279_vm6, %v1437_v47, 0  ;;  %2880 = vmatprep.subr.msk.bf16.mxu1 %vm1279_vm6, %v1437_v47 }
 0x818   : > { %2807 = vmatpush3.bf16.msra.mxu1 %v1446_v48  ;;  %v1499_v62 = vpop.permute.xlu1 %1498 }
 0x819   : > { %2881 = vmatprep.subr.msk.bf16.mxu1 %vm1171_vm4, %v1501_v49  ;;  %v3111_v50 = vpop.eup %3110 }
 0x81a   : > { %v3113_v51 = vpop.eup %3112  ;;  %v1431_v53 = vmul.f32 %v3111_v50, %v3107_v40  ;;  %v1497_v59 = vpop.permute.xlu0 %1496 }
 0x81b   : > { %v1430_v55 = vmul.f32 %v3113_v51, %v3105_v38 }
 0x81c   : > { %v1433_v57 = vpack.c.bf16 %v1431_v53, %v1431_v53 }
 0x81d   : > { %v3115_v52 = vpop.eup %3114 }
 0x81e   : > { %v1429_v54 = vmul.f32 %v3115_v52, %v3109_v42 }
 0x820   : > { %v1432_v56 = vpack.c.bf16 %v1430_v55, %v1429_v54 }
 0x822   : > { %2808 = vmatprep.mubr.msk.bf16.mxu1 %vm1232_vm5, %v1432_v56 }
 0x823   : > { %2809 = vmatmul.mubr.msk.bf16.vlgmr.msra.gmra.mrb[4].mxu1 %vm1232_vm5, %v1433_v57 }
 0x824   : > { %2813 = vmatpush3.bf16.xpose.msra.mxu1 %v1511_v58  ;;  %2816 = vmatprep.mubr.msk.bf16.mxu1 %vm1171_vm4, %v1497_v59 }
 0x825   : > { %2882 = vmatprep.subr.msk.bf16.mxu1 %vm1171_vm4, %v1503_v60 }
 0x82c   : > { %2815 = vmatpush3.bf16.xpose.msra.mxu1 %v1514_v61 }
 0x833   : > { %2817 = vmatmul.mubr.msk.bf16.vlgmr.msra.gmra.mrb[8].mxu1 %vm1171_vm4, %v1499_v62 }
 0x8f6   : > { %v4398_v63 = vpop.f32.mrb[4].mxu1 }
 0x8f7   : > { %v4400_v0 = vpop.f32.mrb[5].mxu1 }
 0x8f8   : > { %v2811_v1 = vpop.f32.mrb[6].mxu1 }
 0x8f9   : > { %v4402_v2 = vpop.f32.mrb[7].mxu1 }
 0x8fa   : > { %v3067_v3 = vpack.i.bf16 %v4402_v2, %v4400_v0 }
 0x906   : > { %v2818_v4 = vpop.f32.mrb[8].mxu1 }
 0x907   : > { %v1550_v5 = vpop.f32.mrb[9].mxu1  ;;  %v1570_v10 = vsel %vm1232_vm5, %v2818_v4, -inf }
 0x908   : > { %v2819_v6 = vpop.f32.mrb[10].mxu1  ;;  %v1564_v7 = vsel %vm1232_vm5, %v1550_v5, -inf }
 0x909   : > { %1565 = vmax.xlane.f32.xlu0 %v1564_v7  ;;  %v1553_v8 = vpop.f32.mrb[11].mxu1 }
 0x90a   : > { %v1567_v9 = vsel %vm1232_vm5, %v1553_v8, -inf }
 0x90b   : > { %1568 = vmax.xlane.f32.xlu1 %v1567_v9 }
 0x90d   : > { %1571 = vmax.xlane.f32.xlu0 %v1570_v10 }
 0x91c   : > { %1599 = vrot.lane.b32.xlu1 %v4332_v28, %s3657_s19 }
 0x996   : > { %v1566_v11 = vpop.xlane.xlu0 %1565 }
 0x997   : > { %v1573_v19 = vsub.f32 %v1550_v5, %v1566_v11 }
 0x998   : > { %v1569_v14 = vpop.xlane.xlu1 %1568 }
 0x999   : > { %v1574_v20 = vsub.f32 %v1553_v8, %v1569_v14  ;;  %v1576_v25 = vmul.f32 1.442695, %v1573_v19 }
 0x99a   : > { %v1572_v21 = vpop.xlane.xlu0 %1571 }
 0x99b   : > { %v1578_v22 = vmul.f32 1.442695, %v1574_v20  ;;  %v1575_v23 = vsub.f32 %v2818_v4, %v1572_v21 }
 0x99c   : > { %v1600_v24 = vpop.permute.xlu1 %1599 }
 0x99d   : > { %3116 = vpow2.f32 %v1578_v22  ;;  %v1580_v26 = vmul.f32 1.442695, %v1575_v23  ;;  %2820 = vmatprep.subr.bf16.mxu0 %v1600_v24 }
 0x99e   : > { %2821 = vmatpush3.bf16.msra.mxu0 %v1600_v24 }
 0x99f   : > { %3118 = vpow2.f32 %v1580_v26 }
 0x9a0   : > { %3120 = vpow2.f32 %v1576_v25 }
 0x9a7   : > { %v3117_v27 = vpop.eup %3116 }
 0x9a8   : > { %v1585_v30 = vsel %vm1232_vm5, %v3117_v27, 0.0 }
 0x9a9   : > { %v3119_v31 = vpop.eup %3118  ;;  %1586 = vadd.xlane.f32.xlu1 %v1585_v30 }
 0x9aa   : > { %v1588_v32 = vsel %vm1232_vm5, %v3119_v31, 0.0  ;;  %v3121_v33 = vpop.eup %3120 }
 0x9ab   : > { %1589 = vadd.xlane.f32.xlu0 %v1588_v32  ;;  %v1582_v34 = vsel %vm1232_vm5, %v3121_v33, 0.0 }
 0x9af   : > { %1583 = vadd.xlane.f32.xlu0 %v1582_v34 }
 0x9ba   : > { %1665 = vrot.lane.b32.xlu1 %v4332_v28, %s3658_s29 }
 0x9be   : > { %1667 = vrot.lane.b32.xlu1 %v4337_v29, %s3658_s29 }
 0x9c2   : > { %1663 = vrot.lane.b32.xlu1 %v4337_v29, %s3659_s3 }
 0x9c5   : > { %1601 = vrot.lane.b32.xlu0 %v4337_v29, %s3657_s19 }
 0x9c9   : > { %1661 = vrot.lane.b32.xlu0 %v4332_v28, %s3659_s3 }
 0xa36   : > { %v1587_v35 = vpop.xlane.xlu1 %1586 }
 0xa38   : > { %v1590_v36 = vpop.xlane.xlu0 %1589 }
 0xa39   : > { %3122 = vrcp.f32 %v1590_v36 }
 0xa3a   : > { %3124 = vrcp.f32 %v1587_v35  ;;  %v1666_v40 = vpop.permute.xlu1 %1665 }
 0xa3b   : > { %v1676_v49 = vsel %vm1171_vm4, %v1666_v40, 0 }
 0xa3c   : > { %v1584_v37 = vpop.xlane.xlu0 %1583 }
 0xa3d   : > { %3126 = vrcp.f32 %v1584_v37  ;;  %v3084_v37 = vld [vmem:[%s4295_s11] sm:$0xff]  }
 0xa3e   : > { %v1668_v51 = vpop.permute.xlu1 %1667 }
 0xa3f   : > { %v1679_v52 = vsel %vm1171_vm4, %v1668_v51, 0 }
 0xa40   : > { %v1602_v38 = vpop.permute.xlu0 %1601 }
 0xa41   : > { %v1611_v39 = vsel %vm1279_vm6, %v1602_v38, 0  ;;  %2883 = vmatprep.subr.msk.bf16.mxu0 %vm1279_vm6, %v1602_v38  ;;  %v3085_v38 = vld [vmem:[%s4295_s11 + $0x8] sm:$0xff]   ;;  %s4728_s11 = scalar_lea.vmem [#allocation11], %s4254_s27 }
 0xa42   : > { %2823 = vmatpush3.bf16.msra.mxu0 %v1611_v39  ;;  %v1664_v53 = vpop.permute.xlu1 %1663 }
 0xa43   : > { %2884 = vmatprep.subr.msk.bf16.mxu0 %vm1171_vm4, %v1666_v40  ;;  %v3123_v41 = vpop.eup %3122 }
 0xa44   : > { %v3125_v42 = vpop.eup %3124  ;;  %v1596_v44 = vmul.f32 %v3123_v41, %v3119_v31  ;;  %v1662_v50 = vpop.permute.xlu0 %1661 }
 0xa45   : > { %v1595_v46 = vmul.f32 %v3125_v42, %v3117_v27 }
 0xa46   : > { %v1598_v48 = vpack.c.bf16 %v1596_v44, %v1596_v44 }
 0xa47   : > { %v3127_v43 = vpop.eup %3126 }
 0xa48   : > { %v1594_v45 = vmul.f32 %v3127_v43, %v3121_v33 }
 0xa4a   : > { %v1597_v47 = vpack.c.bf16 %v1595_v46, %v1594_v45 }
 0xa4c   : > { %2824 = vmatprep.mubr.msk.bf16.mxu0 %vm1232_vm5, %v1597_v47 }
 0xa4d   : > { %2825 = vmatmul.mubr.msk.bf16.vlgmr.msra.gmra.mrb[12].mxu0 %vm1232_vm5, %v1598_v48 }
 0xa4e   : > { %2829 = vmatpush3.bf16.xpose.msra.mxu0 %v1676_v49  ;;  %2832 = vmatprep.mubr.msk.bf16.mxu0 %vm1171_vm4, %v1662_v50 }
 0xa4f   : > { %2885 = vmatprep.subr.msk.bf16.mxu0 %vm1171_vm4, %v1668_v51 }
 0xa56   : > { %2831 = vmatpush3.bf16.xpose.msra.mxu0 %v1679_v52 }
 0xa5d   : > { %2833 = vmatmul.mubr.msk.bf16.vlgmr.msra.gmra.mrb[16].mxu0 %vm1171_vm4, %v1664_v53 }
 0xb20   : > { %v2826_v54 = vpop.f32.mrb[12].mxu0 }
 0xb21   : > { %v1647_v55 = vpop.f32.mrb[13].mxu0 }
 0xb22   : > { %v2827_v56 = vpop.f32.mrb[14].mxu0 }
 0xb23   : > { %v1650_v57 = vpop.f32.mrb[15].mxu0 }
 0xb24   : > { %v3072_v58 = vpack.i.bf16 %v1650_v57, %v1647_v55 }
 0xb30   : > { %v2834_v59 = vpop.f32.mrb[16].mxu0 }
 0xb31   : > { %v1715_v60 = vpop.f32.mrb[17].mxu0  ;;  %v1735_v5 = vsel %vm1232_vm5, %v2834_v59, -inf }
 0xb32   : > { %v2835_v61 = vpop.f32.mrb[18].mxu0  ;;  %v1729_v62 = vsel %vm1232_vm5, %v1715_v60, -inf }
 0xb33   : > { %1730 = vmax.xlane.f32.xlu0 %v1729_v62  ;;  %v1718_v1 = vpop.f32.mrb[19].mxu0 }
 0xb34   : > { %v1732_v4 = vsel %vm1232_vm5, %v1718_v1, -inf }
 0xb35   : > { %1733 = vmax.xlane.f32.xlu1 %v1732_v4 }
 0xb37   : > { %1736 = vmax.xlane.f32.xlu0 %v1735_v5 }
 0xbc0   : > { %v1731_v6 = vpop.xlane.xlu0 %1730 }
 0xbc1   : > { %v1738_v8 = vsub.f32 %v1715_v60, %v1731_v6 }
 0xbc2   : > { %v1734_v7 = vpop.xlane.xlu1 %1733 }
 0xbc3   : > { %v1739_v9 = vsub.f32 %v1718_v1, %v1734_v7  ;;  %v1741_v19 = vmul.f32 1.442695, %v1738_v8 }
 0xbc4   : > { %v1737_v10 = vpop.xlane.xlu0 %1736 }
 0xbc5   : > { %v1743_v11 = vmul.f32 1.442695, %v1739_v9  ;;  %v1740_v14 = vsub.f32 %v2834_v59, %v1737_v10 }
 0xbc7   : > { %3128 = vpow2.f32 %v1743_v11  ;;  %v1745_v20 = vmul.f32 1.442695, %v1740_v14 }
 0xbc9   : > { %3130 = vpow2.f32 %v1745_v20 }
 0xbca   : > { %3132 = vpow2.f32 %v1741_v19 }
 0xbd1   : > { %v3129_v21 = vpop.eup %3128 }
 0xbd2   : > { %v1750_v22 = vsel %vm1232_vm5, %v3129_v21, 0.0 }
 0xbd3   : > { %v3131_v23 = vpop.eup %3130  ;;  %1751 = vadd.xlane.f32.xlu1 %v1750_v22 }
 0xbd4   : > { %v1753_v24 = vsel %vm1232_vm5, %v3131_v23, 0.0  ;;  %v3133_v25 = vpop.eup %3132 }
 0xbd5   : > { %1754 = vadd.xlane.f32.xlu0 %v1753_v24  ;;  %v1747_v26 = vsel %vm1232_vm5, %v3133_v25, 0.0 }
 0xbd9   : > { %1748 = vadd.xlane.f32.xlu0 %v1747_v26 }
 0xbe4   : > { %1764 = vrot.lane.b32.xlu1 %v4332_v28, %s3660_s16 }
 0xbe8   : > { %3068 = vrot.lane.b32.xlu1 %v3067_v3, %s3661_s24 }
 0xbec   : > { %1833 = vrot.lane.b32.xlu1 %v4398_v63, %s3661_s24 }
 0xbef   : > { %1766 = vrot.lane.b32.xlu0 %v4337_v29, %s3660_s16 }
 0xbf0   : > { %1845 = vrot.lane.b32.xlu1 %v2826_v54, %s3662_s9 }
 0xbf3   : > { %3073 = vrot.lane.b32.xlu0 %v3072_v58, %s3662_s9 }
 0xc60   : > { %v1752_v27 = vpop.xlane.xlu1 %1751 }
 0xc62   : > { %v1755_v30 = vpop.xlane.xlu0 %1754 }
 0xc63   : > { %3134 = vrcp.f32 %v1755_v30 }
 0xc64   : > { %v1765_v31 = vpop.permute.xlu1 %1764  ;;  %3136 = vrcp.f32 %v1752_v27 }
 0xc65   : > { %2836 = vmatprep.subr.bf16.mxu1 %v1765_v31 }
 0xc66   : > { %v1749_v28 = vpop.xlane.xlu0 %1748  ;;  %2837 = vmatpush3.bf16.msra.mxu1 %v1765_v31 }
 0xc67   : > { %3138 = vrcp.f32 %v1749_v28 }
 0xc68   : > { %v3069_v44 = vpop.permute.xlu1 %3068 }
 0xc69   : > { %v3071_v48 = vunpack.i.h.bf16 %v3069_v44  ;;  %v3070_v49 = vunpack.i.l.bf16 %v3069_v44  ;;  %v2685_v44 = vld [vmem:[%s4729_s15] ss:$0 sm:$0xff] }
 0xc6a   : > { %v1767_v0 = vpop.permute.xlu0 %1766 }
 0xc6b   : > { %v1776_v2 = vsel %vm1279_vm6, %v1767_v0, 0  ;;  %2886 = vmatprep.subr.msk.bf16.mxu1 %vm1279_vm6, %v1767_v0  ;;  %v1863_v53 = vsel %vm1171_vm4, %v4372_v18, %v3071_v48  ;;  %v1862_v56 = vsel %vm1171_vm4, %v4370_v13, %v3070_v49 }
 0xc6c   : > { %2839 = vmatpush3.bf16.msra.mxu1 %v1776_v2  ;;  %v1834_v45 = vpop.permute.xlu1 %1833 }
 0xc6d   : > { %v3135_v29 = vpop.eup %3134  ;;  %2844 = vmatprep.subr.bf16.mxu1 %v3084_v37  ;;  %v1864_v54 = vsel %vm1171_vm4, %v4368_v12, %v1834_v45  ;;  %v2680_v12 = vld [vmem:[%s4728_s11] ss:$0 sm:$0xff] }
 0xc6e   : > { %v3137_v63 = vpop.eup %3136  ;;  %v1761_v32 = vmul.f32 %v3135_v29, %v3131_v23  ;;  %v3074_v46 = vpop.permute.xlu0 %3073 }
 0xc6f   : > { %v1760_v34 = vmul.f32 %v3137_v63, %v3129_v21  ;;  %v3076_v50 = vunpack.i.h.bf16 %v3074_v46  ;;  %v3075_v51 = vunpack.i.l.bf16 %v3074_v46 }
 0xc70   : > { %v1763_v36 = vpack.c.bf16 %v1761_v32, %v1761_v32  ;;  %v1846_v47 = vpop.permute.xlu1 %1845  ;;  %v3086_v32 = vld [vmem:[%s4300_s10] sm:$0xff]  }
 0xc71   : > { %v3139_v3 = vpop.eup %3138  ;;  %v1868_v57 = vsel %vm1865_vm7, %v1864_v54, %v1846_v47  ;;  %v1866_v60 = vsel %vm1865_vm7, %v1862_v56, %v3075_v51  ;;  %v1867_v61 = vsel %vm1865_vm7, %v1863_v53, %v3076_v50  ;;  %2852 = vmatprep.subr.bf16.mxu0 %v3086_v32 }
 0xc72   : > { %v1759_v33 = vmul.f32 %v3139_v3, %v3133_v25  ;;  %2853 = vmatpush3.bf16.msra.mxu0 %v3086_v32 }
 0xc74   : > { %v1762_v35 = vpack.c.bf16 %v1760_v34, %v1759_v33  ;;  %v3087_v33 = vld [vmem:[%s4300_s10 + $0x8] sm:$0xff]   ;;  %s4730_s10 = scalar_lea.vmem [#allocation14], %s4254_s27 }
 0xc75   : > { %2854 = vmatprep.subr.bf16.mxu0 %v3087_v33  ;;  %v2686_v50 = vld [vmem:[%s4730_s10] ss:$0 sm:$0xff] }
 0xc76   : > { %2840 = vmatprep.mubr.msk.bf16.mxu1 %vm1232_vm5, %v1762_v35  ;;  %2855 = vmatpush3.bf16.msra.mxu0 %v3087_v33 }
 0xc77   : > { %2841 = vmatmul.mubr.msk.bf16.vlgmr.msra.gmra.mrb[12].mxu1 %vm1232_vm5, %v1763_v36 }
 0xc78   : > { %2845 = vmatpush3.bf16.msra.mxu1 %v3084_v37 }
 0xc79   : > { %2846 = vmatprep.subr.bf16.mxu1 %v3085_v38 }
 0xc7c   : > { %2847 = vmatpush3.bf16.msra.mxu1 %v3085_v38 }
 0xd4a   : > { %v2842_v39 = vpop.f32.mrb[12].mxu1 }
 0xd4b   : > { %1857 = vrot.lane.b32.xlu1 %v2842_v39, %s3663_s21  ;;  %v1812_v40 = vpop.f32.mrb[13].mxu1 }
 0xd4c   : > { %v2843_v41 = vpop.f32.mrb[14].mxu1 }
 0xd4d   : > { %v1815_v42 = vpop.f32.mrb[15].mxu1 }
 0xd4e   : > { %v3077_v43 = vpack.i.bf16 %v1815_v42, %v1812_v40 }
 0xd50   : > { %3078 = vrot.lane.b32.xlu0 %v3077_v43, %s3663_s21 }
 0xdbd   : > { %v1858_v52 = vpop.permute.xlu1 %1857 }
 0xdbe   : > { %v1871_v62 = vsel %vm1232_vm5, %v1868_v57, %v1858_v52 }
 0xdbf   : > { %v1873_v5 = vpack.c.bf16 %v1871_v62, %v1871_v62  ;;  %v3091_v62 = vld [vmem:[%s4305_s4 + $0x18] sm:$0xff]  }
 0xdc2   : > { %v3079_v55 = vpop.permute.xlu0 %3078 }
 0xdc3   : > { %v3081_v58 = vunpack.i.h.bf16 %v3079_v55  ;;  %v3080_v59 = vunpack.i.l.bf16 %v3079_v55 }
 0xdc5   : > { %v1869_v1 = vsel %vm1232_vm5, %v1866_v60, %v3080_v59  ;;  %v1870_v4 = vsel %vm1232_vm5, %v1867_v61, %v3081_v58  ;;  %v3088_v59 = vld [vmem:[%s4305_s4] sm:$0xff]   ;;  %v3089_v60 = vld [vmem:[%s4305_s4 + $0x8] sm:$0xff]   ;;  %v3090_v61 = vld [vmem:[%s4305_s4 + $0x10] sm:$0xff]   ;;  %s4732_s4 = scalar_lea.vmem [#allocation17], %s4254_s27 }
 0xdc6   : > { %v1872_v18 = vpack.c.bf16 %v1870_v4, %v1869_v1  ;;  %2860 = vmatprep.subr.bf16.mxu1 %v3088_v59  ;;  %v2687_v1 = vld [vmem:[%s4731_s13] ss:$0 sm:$0xff] }
 0xdc8   : > { %2848 = vmatprep.mubr.msk.bf16.mxu1 %vm1108_vm3, %v1872_v18 }
 0xdc9   : > { %2849 = vmatmul.mubr.msk.bf16.vlgmr.msra.gmra.mrb[16].mxu1 %vm1108_vm3, %v1873_v5 }
 0xdca   : > { %2861 = vmatpush3.bf16.msra.mxu1 %v3088_v59 }
 0xdcb   : > { %2862 = vmatprep.subr.bf16.mxu1 %v3089_v60 }
 0xdce   : > { %2863 = vmatpush3.bf16.msra.mxu1 %v3089_v60 }
 0xdcf   : > { %2864 = vmatprep.subr.bf16.mxu1 %v3090_v61 }
 0xdd2   : > { %2865 = vmatpush3.bf16.msra.mxu1 %v3090_v61 }
 0xdd3   : > { %2866 = vmatprep.subr.bf16.mxu1 %v3091_v62 }
 0xdd6   : > { %2867 = vmatpush3.bf16.msra.mxu1 %v3091_v62 }
 0xe9c   : > { %v2850_v13 = vpop.f32.mrb[16].mxu1 }
 0xe9d   : > { %v1937_v6 = vpop.f32.mrb[17].mxu1  ;;  %v1946_v7 = vadd.f32 %v2850_v13, %v2680_v12 }
 0xe9e   : > { %v1938_v8 = vadd.f32 %v2680_v12, %v1937_v6  ;;  %v2851_v9 = vpop.f32.mrb[18].mxu1 }
 0xe9f   : > { %v1940_v10 = vpop.f32.mrb[19].mxu1  ;;  %v1955_v21 = vadd.f32 %v1946_v7, %v4322_v17 }
 0xea0   : > { %v1941_v11 = vadd.f32 %v2680_v12, %v1940_v10  ;;  %v1953_v14 = vadd.f32 %v1938_v8, %v4318_v15 }
 0xea1   : > { %v1962_v23 = vsel %vm1108_vm3, %v1955_v21, 0.0 }
 0xea2   : > { %v1956_v19 = vsel %vm1108_vm3, %v1953_v14, 0.0  ;;  %v1954_v20 = vadd.f32 %v1941_v11, %v4320_v16 }
 0xea3   : > { %1957 = vadd.xlane.f32.xlu0 %v1956_v19 }
 0xea4   : > { %v1959_v22 = vsel %vm1108_vm3, %v1954_v20, 0.0 }
 0xea5   : > { %1960 = vadd.xlane.f32.xlu1 %v1959_v22 }
 0xea7   : > { %1963 = vadd.xlane.f32.xlu0 %v1962_v23 }
 0xf30   : > { %v1958_v24 = vpop.xlane.xlu0 %1957 }
 0xf31   : > { %v1966_v25 = vmul.f32 0.03125, %v1958_v24 }
 0xf32   : > { %v1961_v26 = vpop.xlane.xlu1 %1960 }
 0xf33   : > { %v1969_v27 = vsub.f32 %v1953_v14, %v1966_v25  ;;  %v1967_v30 = vmul.f32 0.03125, %v1961_v26 }
 0xf34   : > { %v1964_v15 = vpop.xlane.xlu0 %1963 }
 0xf35   : > { %v1970_v31 = vsub.f32 %v1954_v20, %v1967_v30  ;;  %v1968_v28 = vmul.f32 0.03125, %v1964_v15  ;;  %v1972_v16 = vmul.f32 %v1969_v27, %v1969_v27 }
 0xf37   : > { %v1971_v0 = vsub.f32 %v1955_v21, %v1968_v28  ;;  %v1975_v17 = vsel %vm1108_vm3, %v1972_v16, 0.0  ;;  %v1973_v2 = vmul.f32 %v1970_v31, %v1970_v31 }
 0xf38   : > { %1976 = vadd.xlane.f32.xlu0 %v1975_v17 }
 0xf39   : > { %v1978_v29 = vsel %vm1108_vm3, %v1973_v2, 0.0  ;;  %v1974_v63 = vmul.f32 %v1971_v0, %v1971_v0 }
 0xf3a   : > { %1979 = vadd.xlane.f32.xlu1 %v1978_v29 }
 0xf3b   : > { %v1981_v3 = vsel %vm1108_vm3, %v1974_v63, 0.0 }
 0xf3c   : > { %1982 = vadd.xlane.f32.xlu0 %v1981_v3 }
 0xfc5   : > { %v1977_v34 = vpop.xlane.xlu0 %1976 }
 0xfc6   : > { %v1984_v35 = vmul.f32 0.03125, %v1977_v34 }
 0xfc7   : > { %v1980_v36 = vpop.xlane.xlu1 %1979 }
 0xfc8   : > { %v1987_v37 = vadd.f32 1e-12, %v1984_v35  ;;  %v1985_v38 = vmul.f32 0.03125, %v1980_v36  ;;  %v2692_v36 = vld [vmem:[%s4732_s4] ss:$0 sm:$0xff] }
 0xfc9   : > { %v1983_v39 = vpop.xlane.xlu0 %1982 }
 0xfca   : > { %3140 = vrsqrt.f32 %v1987_v37  ;;  %v1988_v40 = vadd.f32 1e-12, %v1985_v38  ;;  %v1986_v41 = vmul.f32 0.03125, %v1983_v39 }
 0xfcc   : > { %3142 = vrsqrt.f32 %v1988_v40  ;;  %v1989_v42 = vadd.f32 1e-12, %v1986_v41 }
 0xfce   : > { %3144 = vrsqrt.f32 %v1989_v42 }
 0xfd4   : > { %v3141_v43 = vpop.eup %3140 }
 0xfd5   : > { %v1993_v45 = vmul.f32 %v3141_v43, %v1969_v27 }
 0xfd6   : > { %v3143_v46 = vpop.eup %3142 }
 0xfd7   : > { %v1994_v47 = vmul.f32 %v3143_v46, %v1970_v31  ;;  %v2002_v48 = vmul.f32 %v2685_v44, %v1993_v45 }
 0xfd8   : > { %v3145_v49 = vpop.eup %3144 }
 0xfd9   : > { %v1995_v51 = vmul.f32 %v3145_v49, %v1971_v0  ;;  %v2003_v52 = vmul.f32 %v2685_v44, %v1994_v47  ;;  %v4478_v53 = vadd.f32 %v2686_v50, %v2002_v48 }
 0xfdb   : > { %v4480_v54 = vadd.f32 %v2686_v50, %v2003_v52  ;;  %v2004_v55 = vmul.f32 %v2685_v44, %v1995_v51 }
 0xfdd   : > { %v2014_v56 = vpack.c.bf16 %v4480_v54, %v4478_v53  ;;  %v4484_v57 = vadd.f32 %v2686_v50, %v2004_v55 }
 0xfdf   : > { %2856 = vmatprep.mubr.msk.bf16.mxu0 %vm1108_vm3, %v2014_v56  ;;  %v2015_v58 = vpack.c.bf16 %v4484_v57, %v4484_v57 }
 0xfe1   : > { %2857 = vmatmul.mubr.msk.bf16.vlgmr.msra.gmra.mrb[20].mxu0 %vm1108_vm3, %v2015_v58 }
0x10b4   : > { %v2858_v4 = vpop.f32.mrb[20].mxu0 }
0x10b5   : > { %v2088_v18 = vadd.f32 %v2858_v4, %v2687_v1  ;;  %v2079_v5 = vpop.f32.mrb[21].mxu0 }
0x10b6   : > { %v2080_v12 = vadd.f32 %v2687_v1, %v2079_v5  ;;  %v2859_v13 = vpop.f32.mrb[22].mxu0 }
0x10b7   : > { %v2098_v6 = vmul.f32 0.044715, %v2088_v18  ;;  %v2082_v7 = vpop.f32.mrb[23].mxu0  ;;  %v2095_v17 = vmul.f32 0.5, %v2088_v18 }
0x10b8   : > { %v2096_v8 = vmul.f32 0.044715, %v2080_v12  ;;  %v2083_v9 = vadd.f32 %v2687_v1, %v2082_v7  ;;  %v2093_v2 = vmul.f32 0.5, %v2080_v12 }
0x10b9   : > { %v2101_v10 = vmul.f32 %v2098_v6, %v2088_v18 }
0x10ba   : > { %v2099_v11 = vmul.f32 %v2096_v8, %v2080_v12  ;;  %v2097_v14 = vmul.f32 0.044715, %v2083_v9  ;;  %v2094_v29 = vmul.f32 0.5, %v2083_v9 }
0x10bb   : > { %v2104_v19 = vmul.f32 %v2101_v10, %v2088_v18 }
0x10bc   : > { %v2102_v20 = vmul.f32 %v2099_v11, %v2080_v12  ;;  %v2100_v21 = vmul.f32 %v2097_v14, %v2083_v9  ;;  %v2699_v14 = vld [vmem:[%s4733_s8] ss:$0 sm:$0xff] }
0x10bd   : > { %v2107_v22 = vadd.f32 %v2104_v19, %v2088_v18 }
0x10be   : > { %v2105_v23 = vadd.f32 %v2102_v20, %v2080_v12  ;;  %v2103_v24 = vmul.f32 %v2100_v21, %v2083_v9  ;;  %v2700_v21 = vld [vmem:[%s848_s26] ss:$0 sm:$0xff] }
0x10bf   : > { %v2110_v25 = vmul.f32 0.7978846, %v2107_v22 }
0x10c0   : > { %v2108_v26 = vmul.f32 0.7978846, %v2105_v23  ;;  %v2106_v27 = vadd.f32 %v2103_v24, %v2083_v9 }
0x10c1   : > { %3146 = vtanh.f32 %v2110_v25 }
0x10c2   : > { %3148 = vtanh.f32 %v2108_v26  ;;  %v2109_v30 = vmul.f32 0.7978846, %v2106_v27 }
0x10c4   : > { %3150 = vtanh.f32 %v2109_v30 }
0x10cb   : > { %v3147_v15 = vpop.eup %3146 }
0x10cc   : > { %v3149_v31 = vpop.eup %3148  ;;  %v2116_v28 = vadd.f32 1.0, %v3147_v15 }
0x10cd   : > { %v2114_v16 = vadd.f32 1.0, %v3149_v31 }
0x10ce   : > { %v3151_v0 = vpop.eup %3150  ;;  %v2119_v3 = vmul.f32 %v2116_v28, %v2095_v17 }
0x10cf   : > { %v2115_v63 = vadd.f32 1.0, %v3151_v0  ;;  %v2117_v32 = vmul.f32 %v2114_v16, %v2093_v2 }
0x10d0   : > { %v2121_v35 = vpack.c.bf16 %v2119_v3, %v2119_v3 }
0x10d1   : > { %v2118_v33 = vmul.f32 %v2115_v63, %v2094_v29 }
0x10d3   : > { %v2120_v34 = vpack.c.bf16 %v2118_v33, %v2117_v32 }
0x10d5   : > { %2868 = vmatprep.mubr.msk.bf16.mxu1 %vm2161_vm8, %v2120_v34 }
0x10d6   : > { %2869 = vmatmul.mubr.msk.bf16.vlgmr.msra.gmra.mrb[20].mxu1 %vm2161_vm8, %v2121_v35 }
0x11a9   : > { %v2870_v37 = vpop.f32.mrb[20].mxu1 }
0x11aa   : > { %v2202_v38 = vpop.f32.mrb[21].mxu1  ;;  %v2211_v39 = vadd.f32 %v2870_v37, %v2692_v36 }
0x11ab   : > { %v2203_v40 = vadd.f32 %v2692_v36, %v2202_v38  ;;  %v2871_v41 = vpop.f32.mrb[22].mxu1 }
0x11ac   : > { %v2205_v42 = vpop.f32.mrb[23].mxu1  ;;  %v2220_v47 = vadd.f32 %v2211_v39, %v4484_v57 }
0x11ad   : > { %v2206_v43 = vadd.f32 %v2692_v36, %v2205_v42  ;;  %v2218_v44 = vadd.f32 %v2203_v40, %v4478_v53 }
0x11ae   : > { %v2227_v49 = vsel %vm1108_vm3, %v2220_v47, 0.0 }
0x11af   : > { %v2221_v45 = vsel %vm1108_vm3, %v2218_v44, 0.0  ;;  %v2219_v46 = vadd.f32 %v2206_v43, %v4480_v54 }
0x11b0   : > { %2222 = vadd.xlane.f32.xlu1 %v2221_v45 }
0x11b1   : > { %v2224_v48 = vsel %vm1108_vm3, %v2219_v46, 0.0 }
0x11b2   : > { %2225 = vadd.xlane.f32.xlu0 %v2224_v48 }
0x11b4   : > { %2228 = vadd.xlane.f32.xlu1 %v2227_v49 }
0x123d   : > { %v2223_v50 = vpop.xlane.xlu1 %2222 }
0x123e   : > { %v2230_v51 = vmul.f32 0.03125, %v2223_v50 }
0x123f   : > { %v2226_v52 = vpop.xlane.xlu0 %2225 }
0x1240   : > { %v2233_v55 = vsub.f32 %v2218_v44, %v2230_v51  ;;  %v2231_v56 = vmul.f32 0.03125, %v2226_v52 }
0x1241   : > { %v2229_v58 = vpop.xlane.xlu1 %2228 }
0x1242   : > { %v2234_v53 = vsub.f32 %v2219_v46, %v2231_v56  ;;  %v2232_v59 = vmul.f32 0.03125, %v2229_v58  ;;  %v2236_v60 = vmul.f32 %v2233_v55, %v2233_v55 }
0x1244   : > { %v2235_v61 = vsub.f32 %v2220_v47, %v2232_v59  ;;  %v2239_v54 = vsel %vm1108_vm3, %v2236_v60, 0.0  ;;  %v2237_v57 = vmul.f32 %v2234_v53, %v2234_v53 }
0x1245   : > { %2240 = vadd.xlane.f32.xlu0 %v2239_v54 }
0x1246   : > { %v2242_v62 = vsel %vm1108_vm3, %v2237_v57, 0.0  ;;  %v2238_v1 = vmul.f32 %v2235_v61, %v2235_v61 }
0x1247   : > { %2243 = vadd.xlane.f32.xlu1 %v2242_v62 }
0x1248   : > { %v2245_v4 = vsel %vm1108_vm3, %v2238_v1, 0.0 }
0x1249   : > { %2246 = vadd.xlane.f32.xlu0 %v2245_v4 }
0x12d2   : > { %v2241_v18 = vpop.xlane.xlu0 %2240 }
0x12d3   : > { %v2248_v5 = vmul.f32 0.03125, %v2241_v18 }
0x12d4   : > { %v2244_v12 = vpop.xlane.xlu1 %2243 }
0x12d5   : > { %v2251_v13 = vadd.f32 1e-12, %v2248_v5  ;;  %v2249_v6 = vmul.f32 0.03125, %v2244_v12 }
0x12d6   : > { %v2247_v7 = vpop.xlane.xlu0 %2246 }
0x12d7   : > { %3152 = vrsqrt.f32 %v2251_v13  ;;  %v2252_v8 = vadd.f32 1e-12, %v2249_v6  ;;  %v2250_v9 = vmul.f32 0.03125, %v2247_v7 }
0x12d9   : > { %3154 = vrsqrt.f32 %v2252_v8  ;;  %v2253_v10 = vadd.f32 1e-12, %v2250_v9 }
0x12db   : > { %3156 = vrsqrt.f32 %v2253_v10 }
0x12e1   : > { %v3153_v11 = vpop.eup %3152 }
0x12e2   : > { %v2257_v19 = vmul.f32 %v3153_v11, %v2233_v55 }
0x12e3   : > { %v3155_v20 = vpop.eup %3154 }
0x12e4   : > { %v2266_v22 = vmul.f32 %v2699_v14, %v2257_v19  ;;  %v2258_v23 = vmul.f32 %v3155_v20, %v2234_v53 }
0x12e5   : > { %v3157_v24 = vpop.eup %3156 }
0x12e6   : > { %v2275_v25 = vadd.f32 %v2700_v21, %v2266_v22  ;;  %v2267_v26 = vmul.f32 %v2699_v14, %v2258_v23  ;;  %v2259_v27 = vmul.f32 %v3157_v24, %v2235_v61  ;;  %2284 = sbr.rel (%p2701_p6) target bundleno = 4845 (0x12ed), region = 140 }
0x12e8   : > { %2278 = vst.msk [vmem:[#allocation2] sm:$0xff] %vm1108_vm3, %v2275_v25  ;;  %v2276_v30 = vadd.f32 %v2700_v21, %v2267_v26  ;;  %v2268_v15 = vmul.f32 %v2699_v14, %v2259_v27  ;;  %2285 = vst.msk [vmem:[%s4308_s22] sm:$0xff] (!%p2701_p6), %vm1108_vm3, %v2275_v25 }
0x12ea   : > { %2279 = vst.msk [vmem:[#allocation2 + $0x8] sm:$0xff] %vm1108_vm3, %v2276_v30  ;;  %v2277_v31 = vadd.f32 %v2700_v21, %v2268_v15  ;;  %2286 = vst.msk [vmem:[%s4308_s22 + $0x8] sm:$0xff] (!%p2701_p6), %vm1108_vm3, %v2276_v30 }
0x12ec   : > { %2280 = vst.msk [vmem:[#allocation2 + $0x10] sm:$0xff] %vm1108_vm3, %v2277_v31  ;;  %2287 = vst.msk [vmem:[%s4308_s22 + $0x10] sm:$0xff] (!%p2701_p6), %vm1108_vm3, %v2277_v31 }
0x12ed PF: > { %s4735_s27 = sld [smem:[#allocation35_spill]]  ;;  %s2302_s5 = sshll.u32 %s4308_s22, 4  ;;  %s4528_s5 = int_to_ptr.vmem [resolvable:$true] %s2302_s5 }
0x12ee   : > { %s4736_s17 = sld [smem:[#allocation62_spill]]  ;;  %s2289_s20 = scalar_lea.sflag [#allocation5], %s4232_s7 }
0x12ef   : > { %s3486_s30 = scalar_lea.vmem %s4528_s5, 384  ;;  %p4737_p2 = scmp.ne.s32.totalorder %s4689_s6, 0 }
0x12f0   : > { %p3487_p4 = scmp.ne.s32.totalorder %s4528_s5, %s3486_s30  ;;  %s3664_s0 = smov [#allocation21]  }
0x12f1   : > { %s3490_s18 = sshll.u32 %s3664_s0, 4  ;;  %s3491_s18 = int_to_ptr.vmem [resolvable:$false] %s3490_s18 }
0x12f2   : > { %p3488_p11 = pnand %p3487_p4, %p4737_p2  ;;  %s3492_s22 = scalar_lea.vmem %s3491_s18, 768 }
0x12f3   : > { %s2888_s26 = smul.u32 384, %s4735_s27  ;;  %p3493_p9 = scmp.lt.s32.totalorder %s4528_s5, %s3491_s18 }
0x12f4   : > { %p3489_p1 = pneg %p3488_p11  ;;  %p3494_p0 = scmp.lt.s32.totalorder %s3492_s22, %s3486_s30 }
0x12f5   : > { %s4526_s12 = scalar_lea.hbm %s4736_s17, %s2888_s26 }
0x12f6   : > { %p3495_p7 = por %p3494_p0, %p3493_p9 }
0x12f8   : > { %p3496_p12 = pnand %p3495_p7, %p3489_p1 }
0x12fa   : > { %3499 = shalt.err (!%p3496_p12)
}
0x12fb   : > { %s3500_s19 = scalar_lea.hbm %s4526_s12, 384  ;;  %s3504_s16 = scalar_lea.hbm %s4736_s17, 768 }
0x12fc   : > { %p3501_p5 = scmp.ne.s32.totalorder %s4526_s12, %s3500_s19  ;;  %p3505_p8 = scmp.lt.u32.totalorder %s4526_s12, %s4736_s17 }
0x12fd   : > { %p3506_p13 = scmp.lt.u32.totalorder %s3504_s16, %s3500_s19  ;;  %p3508_p4 = scmp.lt.u32.totalorder %s3500_s19, %s4526_s12 }
0x12fe   : > { %p3502_p3 = pnand %p3501_p5, %p4737_p2 }
0x12ff   : > { %p3507_p6 = por %p3506_p13, %p3505_p8 }
0x1300   : > { %p3503_p10 = pneg %p3502_p3 }
0x1301   : > { %p3509_p11 = por %p3508_p4, %p3507_p6 }
0x1303   : > { %p3510_p1 = pnand %p3509_p11, %p3503_p10 }
0x1305   : > { %3513 = shalt.err (!%p3510_p1)
}
0x1306   : > { %s3665_s11 = smov 128  }
0x1307   : > { %2913 = dma.vmem_to_hbm [thread:$0]  (%p4737_p2), %s4528_s5, 384, %s4526_s12, %s2289_s20, %s3665_s11, %s3665_s11, %s3661_s24  }
0x1308 PF: > { %s4738_s15 = sld [smem:[#allocation32_spill]]  ;;  %s4739_s10 = sld [smem:[#allocation44_spill]] }
0x1309   : > { %p2957_p9 = scmp.ge.s32.totalorder %s3632_s1, 2 }
0x130e   : > { %s2317_s13 = sand.u32 1, %s4738_s15   ;;  %p4740_p0 = scmp.ne.s32.totalorder %s4739_s10, 0 }
0x130f   : > { %s2318_s4 = scalar_lea.sflag [#allocation5], %s2317_s13 }
0x1310   : > { %p2951_p7 = pnand %p2957_p9, %p4740_p0 }
0x1312   : > { %3587 = dma.done.wait (!%p2951_p7), %s2318_s4, 384  }
0x1313   : > { %3589 = vsyncadd (!%p2951_p7), %s2318_s4, 4294966912  ;;  %s48_s1 = sadd.s32 1, %s3632_s1   ;;  %s4741_s24 = sld [smem:[#allocation30_spill]] }
0x1314   : > { %p45_p12 = scmp.ge.s32.totalorder %s48_s1, 6   ;;  %s4742_s25 = sld [smem:[#allocation31_spill]] }
0x1315   : > { %s4743_s26 = sld [smem:[#allocation42_spill]]  ;;  %s4744_s6 = sld [smem:[#allocation33_spill]] }
0x1316   : > { %s4745_s29 = sld [smem:[#allocation43_spill]]  ;;  %s4746_s0 = sld [smem:[#allocation36_spill]] }
0x1317   : > { %s4747_s30 = sld [smem:[#allocation37_spill]]  ;;  %s4748_s18 = sld [smem:[#allocation40_spill]] }
0x1318   : > { %s4749_s19 = sld [smem:[#allocation41_spill]]  ;;  %s4750_s27 = smov %s3608_s28 }
0x1319   :  { %47 = sbr.rel (!%p45_p12) target bundleno = 38 (0x26), region = 269 }
0x131b   : > { %s4751_s28 = smov %s4744_s6 }
0x1320   :  { %2323 = vsyncpa [#allocation4], 1 }
0x1321   :  { %2325 = vsyncpa [#allocation4 + $0x1], 1 }
0x1322   :  { %2326 = vsyncpa [#allocation7], 1 }
0x1323   :  { %2328 = vsyncpa [#allocation7 + $0x1], 1 }
0x1324   :  { %2329 = vsyncpa [#allocation10], 1 }
0x1325   :  { %2331 = vsyncpa [#allocation10 + $0x1], 1 }
0x1326   :  { %2332 = vsyncpa [#allocation13], 1 }
0x1327   :  { %2334 = vsyncpa [#allocation13 + $0x1], 1 }
0x1328   :  { %2335 = vsyncpa [#allocation16], 1 }
0x1329   :  { %2337 = vsyncpa [#allocation16 + $0x1], 1 }
0x132a   :  { %2338 = vsyncpa [#allocation19], 1 }
0x132b   :  { %2340 = vsyncpa [#allocation19 + $0x1], 1 }
0x132c   :  { %2341 = vsyncpa [#allocation5], 1 }
0x132d   :  { %2343 = vsyncpa [#allocation5 + $0x1], 1 }

</bundles_post_ra>
